<compile_context>
chip_gen: v7x
topology: tpu7x:2x2x1
jax: 0.10.0
libtpu: 0.0.40
codegen_flags: <defaults>
</compile_context>

<pallas_src>
import jax
import jax.numpy as jnp
from jax import lax
from jax.experimental import pallas as pl
from jax.experimental.pallas import tpu as pltpu


# ---------------------------------------------------------------------------
# In-kernel helpers
# ---------------------------------------------------------------------------
def _conv3x3(a, w_ref, mask_top, mask_bot, reflect):
    """a: (R, Lin) rows of nb stacked samples (R = nb*H).
    w_ref: (3*Lin, Lout) with the three row taps stacked along K and the kx
    taps + column padding already folded in.

    Row padding is done with row rolls + per-sample boundary fixups, so the
    whole 3x3 conv is a single MXU matmul."""
    up = jnp.roll(a, 1, axis=0)     # row r -> a[r-1]   (wraps; patched below)
    dn = jnp.roll(a, -1, axis=0)    # row r -> a[r+1]   (wraps; patched below)
    if reflect:                     # ReflectionPad2d(1): row -1 -> 1, row H -> H-2
        up_f = jnp.where(mask_top, dn, up)
        dn_f = jnp.where(mask_bot, up, dn)
    else:                           # zero row padding
        up_f = jnp.where(mask_top, 0.0, up)
        dn_f = jnp.where(mask_bot, 0.0, dn)
    lhs = jnp.concatenate([up_f, a, dn_f], axis=1)       # (R, 3*Lin)
    return jnp.dot(lhs, w_ref[...], preferred_element_type=jnp.float32)


def _instance_norm(a, g_ref, s_ref, nb, H):
    """a: (nb*H, L), channel-interleaved lanes.  Per-sample, per-channel IN.

    One pass: [sum, sum_sq] -> (mean, E[x^2]) via one gather matmul (1/(H*W)
    is folded into g_ref), var = E[x^2] - mean^2, then one scatter matmul
    broadcasts (scale, shift) back onto the lane layout."""
    if nb == 1:
        stats = jnp.concatenate(
            [jnp.sum(a, axis=0, keepdims=True),
             jnp.sum(a * a, axis=0, keepdims=True)], axis=0)            # (2, L)
        m = jnp.dot(stats, g_ref[...], preferred_element_type=jnp.float32)
        mean, ex2 = m[0:1], m[1:2]                                      # (1, c)
        scale = lax.rsqrt(ex2 - mean * mean + 1e-5)
        shift = -mean * scale
        sb = jnp.dot(jnp.concatenate([scale, shift], axis=0), s_ref[...],
                     preferred_element_type=jnp.float32)                # (2, L)
        return a * sb[0:1] + sb[1:2]

    # nb > 1: per-sample segment reduce / broadcast via tiny selector matmuls
    # (kept strictly 2-D so lowering stays simple).
    R = nb * H
    seg = (lax.broadcasted_iota(jnp.int32, (nb, R), 1) // H ==
           lax.broadcasted_iota(jnp.int32, (nb, R), 0)).astype(jnp.float32)
    segT = (lax.broadcasted_iota(jnp.int32, (R, nb), 0) // H ==
            lax.broadcasted_iota(jnp.int32, (R, nb), 1)).astype(jnp.float32)
    stats = jnp.concatenate(
        [jnp.dot(seg, a, preferred_element_type=jnp.float32),
         jnp.dot(seg, a * a, preferred_element_type=jnp.float32)], axis=0)
    m = jnp.dot(stats, g_ref[...], preferred_element_type=jnp.float32)  # (2nb, c)
    mean, ex2 = m[:nb], m[nb:]
    scale = lax.rsqrt(ex2 - mean * mean + 1e-5)
    shift = -mean * scale
    sb = jnp.dot(jnp.concatenate([scale, shift], axis=0), s_ref[...],
                 preferred_element_type=jnp.float32)                    # (2nb, L)
    scale_rows = jnp.dot(segT, sb[:nb], preferred_element_type=jnp.float32)
    shift_rows = jnp.dot(segT, sb[nb:], preferred_element_type=jnp.float32)
    return a * scale_rows + shift_rows


def _fused_kernel(x_ref, y_ref, wu_ref, w1_ref, w2_ref, bu_ref,
                  g1_ref, s1_ref, g2_ref, s2_ref, o_ref):
    nb, H, Lx = x_ref.shape
    Ly = y_ref.shape[2]
    R = nb * H

    x = x_ref[...].reshape(R, Lx)
    y = y_ref[...].reshape(R, Ly)

    # Per-sample boundary-row masks (tiny (R,1) iota/compare). The row rolls
    # in _conv3x3 wrap across sample boundaries; these masks patch those rows.
    rows = lax.broadcasted_iota(jnp.int32, (R, 1), 0)
    mask_top = (rows % H) == 0
    mask_bot = (rows % H) == (H - 1)

    # ---- stage 1: up_conv (3x3, zero pad), bias, ReLU         2C -> C ----
    y2 = _conv3x3(y, wu_ref, mask_top, mask_bot, reflect=False)
    y2 = jnp.maximum(y2 + bu_ref[...], 0.0)

    # ---- stage 2: conv1 on cat([x, y2]) (reflect pad), IN, ReLU  2C -> 2C --
    xc = jnp.concatenate([x, y2], axis=1)          # lane concat, stays in vregs
    h = _conv3x3(xc, w1_ref, mask_top, mask_bot, reflect=True)
    h = jnp.maximum(_instance_norm(h, g1_ref, s1_ref, nb, H), 0.0)

    # ---- stage 3: conv2 (reflect pad), IN                     2C -> out ----
    o = _conv3x3(h, w2_ref, mask_top, mask_bot, reflect=True)
    o = _instance_norm(o, g2_ref, s2_ref, nb, H)
    o_ref[...] = o.reshape(nb, H, o.shape[1])


# ---------------------------------------------------------------------------
# Wrapper-side weight / selector preprocessing
# ---------------------------------------------------------------------------
def _build_col_mix(w_hwio, Wdim, reflect):
    """w_hwio: (3, 3, Cin, Cout) -> (3, Wdim*Cin, Wdim*Cout).

    For each ky, build the banded matrix that applies the three kx taps and
    the column padding (zero or reflect) to a channel-interleaved row."""
    Cin, Cout = w_hwio.shape[2], w_hwio.shape[3]
    wo = jnp.arange(Wdim)
    wi = jnp.arange(Wdim)
    mats = []
    for ky in range(3):
        M = jnp.zeros((Wdim, Cin, Wdim, Cout), w_hwio.dtype)
        for kx in range(3):
            src = wo + kx - 1                       # source column per output col
            if reflect:
                src = jnp.abs(src)
                src = jnp.where(src > Wdim - 1, 2 * (Wdim - 1) - src, src)
            # zero-pad: out-of-range src matches no wi -> contribution dropped
            onehot = (wi[:, None] == src[None, :]).astype(w_hwio.dtype)  # (wi, wo)
            M = M + onehot[:, None, :, None] * w_hwio[ky, kx][None, :, None, :]
        mats.append(M.reshape(Wdim * Cin, Wdim * Cout))
    return jnp.stack(mats, axis=0)


def _in_selectors(L, cout, hw):
    """Channel gather (L,cout) with 1/hw folded in, and scatter (cout,L)."""
    onehot = (jnp.arange(L)[:, None] % cout
              == jnp.arange(cout)[None, :]).astype(jnp.float32)
    return onehot / hw, onehot.T


def _pick_block_batch(N, H):
    """Samples per grid step: feed the MXU (target <= 256 rows) while keeping
    >= 2 grid steps (when N allows) so both v7x TensorCores get work."""
    best = 1
    for nb in range(1, N + 1):
        if N % nb != 0:
            continue
        if nb * H > 256:
            continue
        if N >= 2 and N // nb < 2:
            continue
        best = nb
    return best


def transform_up_layer_forward(x_nhwc, y_nhwc, params):
    """x_nhwc: (N,H,W,C), y_nhwc: (N,H,W,2C).  Returns (N,H,W,out) NHWC."""
    N, H, W, C = x_nhwc.shape
    C2 = y_nhwc.shape[-1]
    Cout = params["w2"].shape[-1]
    hw = H * W

    # Fold kx taps + column padding into matmul-ready banded weights, then
    # stack the three ky (row) taps along K -> one matmul per conv.
    w_up_k = _build_col_mix(params["w_up"], W,
                            reflect=False).reshape(3 * W * C2, W * C)
    m1x = _build_col_mix(params["w1"][:, :, :C, :], W, reflect=True)
    m1y = _build_col_mix(params["w1"][:, :, C:, :], W, reflect=True)
    w1_k = jnp.concatenate([m1x, m1y], axis=1).reshape(6 * W * C, W * C2)
    w2_k = _build_col_mix(params["w2"], W,
                          reflect=True).reshape(3 * W * C2, W * Cout)
    # NOTE: on v6e/v7x these could be cast to bf16 (MXU-native, halves VMEM);
    # kept f32 so the 2e-4 correctness check below stays tight.

    # up_conv bias, pre-tiled to the interleaved lane layout.  b1/b2 are
    # dropped entirely: IN's mean subtraction cancels them exactly.
    b_up = jnp.tile(params["b_up"], W).reshape(1, W * C)

    # Hoisted InstanceNorm selector matrices (1/(H*W) folded into the gather).
    g1, s1 = _in_selectors(W * C2, C2, hw)
    g2, s2 = _in_selectors(W * Cout, Cout, hw)

    # Channel-interleaved lane-dense layout: (N, H, W*C).
    x_l = x_nhwc.reshape(N, H, W * C)
    y_l = y_nhwc.reshape(N, H, W * C2)

    nb = _pick_block_batch(N, H)
    const2d = lambda n: (0, 0)

    out = pl.pallas_call(
        _fused_kernel,
        out_shape=jax.ShapeDtypeStruct((N, H, W * Cout), jnp.float32),
        grid=(N // nb,),
        in_specs=[
            pl.BlockSpec((nb, H, W * C), lambda n: (n, 0, 0)),
            pl.BlockSpec((nb, H, W * C2), lambda n: (n, 0, 0)),
            pl.BlockSpec(w_up_k.shape, const2d),
            pl.BlockSpec(w1_k.shape, const2d),
            pl.BlockSpec(w2_k.shape, const2d),
            pl.BlockSpec(b_up.shape, const2d),
            pl.BlockSpec(g1.shape, const2d),
            pl.BlockSpec(s1.shape, const2d),
            pl.BlockSpec(g2.shape, const2d),
            pl.BlockSpec(s2.shape, const2d),
        ],
        out_specs=pl.BlockSpec((nb, H, W * Cout), lambda n: (n, 0, 0)),
        compiler_params=pltpu.CompilerParams(
            dimension_semantics=("parallel",),
            vmem_limit_bytes=32 * 1024 * 1024),
    )(x_l, y_l, w_up_k, w1_k, w2_k, b_up, g1, s1, g2, s2)

    return out.reshape(N, H, W, Cout)


# ---------------------------------------------------------------------------
# Pure-JAX reference (for correctness check)
# ---------------------------------------------------------------------------
def _conv_ref(x_pad, w, b):
    return lax.conv_general_dilated(
        x_pad, w, window_strides=(1, 1), padding="VALID",
        dimension_numbers=("NHWC", "HWIO", "NHWC")) + b


def _inorm_ref(x):
    mean = jnp.mean(x, axis=(1, 2), keepdims=True)
    var = jnp.mean((x - mean) ** 2, axis=(1, 2), keepdims=True)
    return (x - mean) * lax.rsqrt(var + 1e-5)


def transform_up_layer_ref(x_nhwc, y_nhwc, params):
    y_pad = jnp.pad(y_nhwc, ((0, 0), (1, 1), (1, 1), (0, 0)))
    y2 = jnp.maximum(_conv_ref(y_pad, params["w_up"], params["b_up"]), 0.0)
    c = jnp.concatenate([x_nhwc, y2], axis=-1)
    h = jnp.pad(c, ((0, 0), (1, 1), (1, 1), (0, 0)), mode="reflect")
    h = jnp.maximum(_inorm_ref(_conv_ref(h, params["w1"], params["b1"])), 0.0)
    h = jnp.pad(h, ((0, 0), (1, 1), (1, 1), (0, 0)), mode="reflect")
    return _inorm_ref(_conv_ref(h, params["w2"], params["b2"]))


# ---------------------------------------------------------------------------
if __name__ == "__main__":
    key = jax.random.PRNGKey(0)
    in_features, out_features = 4, 4
    N, H, W = 2, 16, 16
    C2 = in_features * 2  # channels of y / of the concat

    # Inputs constructed in PyTorch NCHW convention, then moved to NHWC.
    k1, k2, k3, k4, k5, k6, k7, k8 = jax.random.split(key, 8)
    x_nchw = jax.random.normal(k1, (N, in_features, H, W), jnp.float32)
    y_nchw = jax.random.normal(k2, (N, C2, H, W), jnp.float32)
    x_nhwc = jnp.transpose(x_nchw, (0, 2, 3, 1))
    y_nhwc = jnp.transpose(y_nchw, (0, 2, 3, 1))

    # Deterministic synthetic parameters (HWIO layout for NHWC convs).
    params = {
        "w_up": 0.1 * jax.random.normal(k3, (3, 3, C2, in_features), jnp.float32),
        "b_up": 0.1 * jax.random.normal(k4, (in_features,), jnp.float32),
        "w1":   0.1 * jax.random.normal(k5, (3, 3, C2, C2), jnp.float32),
        "b1":   0.1 * jax.random.normal(k6, (C2,), jnp.float32),
        "w2":   0.1 * jax.random.normal(k7, (3, 3, C2, out_features), jnp.float32),
        "b2":   0.1 * jax.random.normal(k8, (C2 // 2,), jnp.float32)[:out_features]
                if False else
                0.1 * jax.random.normal(k8, (out_features,), jnp.float32),
    }

    fwd = jax.jit(transform_up_layer_forward)
    out = jax.block_until_ready(fwd(x_nhwc, y_nhwc, params))

    ref = jax.block_until_ready(transform_up_layer_ref(x_nhwc, y_nhwc, params))
    assert out.shape == (N, H, W, out_features)
    assert jnp.allclose(out, ref, atol=2e-4, rtol=2e-4), (
        f"max abs err {jnp.max(jnp.abs(out - ref))}")

    print("KERNEL_OK")
</pallas_src>

<mosaic_0001>
module attributes {stable_mosaic.version = 11 : i64} {
  func.func @_fused_kernel(%arg0: i32, %arg1: memref<1x16x64xf32, #tpu.memory_space<vmem>>, %arg2: memref<1x16x128xf32, #tpu.memory_space<vmem>>, %arg3: memref<384x64xf32, #tpu.memory_space<vmem>>, %arg4: memref<384x128xf32, #tpu.memory_space<vmem>>, %arg5: memref<384x64xf32, #tpu.memory_space<vmem>>, %arg6: memref<1x64xf32, #tpu.memory_space<vmem>>, %arg7: memref<128x8xf32, #tpu.memory_space<vmem>>, %arg8: memref<8x128xf32, #tpu.memory_space<vmem>>, %arg9: memref<64x4xf32, #tpu.memory_space<vmem>>, %arg10: memref<4x64xf32, #tpu.memory_space<vmem>>, %arg11: memref<1x16x64xf32, #tpu.memory_space<vmem>>) attributes {dimension_semantics = [#tpu.dimension_semantics<parallel>], iteration_bounds = array<i64: 2>, scalar_prefetch = 0 : i64, scratch_operands = 0 : i64, tpu.core_type = #tpu.core_type<tc>, window_params = [{transform_indices = @transform_0, window_bounds = array<i64: 1, 16, 64>}, {transform_indices = @transform_1, window_bounds = array<i64: 1, 16, 128>}, {pipeline_mode = #tpu.pipeline_mode<synchronous>, transform_indices = @transform_2, window_bounds = array<i64: 384, 64>}, {pipeline_mode = #tpu.pipeline_mode<synchronous>, transform_indices = @transform_3, window_bounds = array<i64: 384, 128>}, {pipeline_mode = #tpu.pipeline_mode<synchronous>, transform_indices = @transform_4, window_bounds = array<i64: 384, 64>}, {pipeline_mode = #tpu.pipeline_mode<synchronous>, transform_indices = @transform_5, window_bounds = array<i64: 1, 64>}, {pipeline_mode = #tpu.pipeline_mode<synchronous>, transform_indices = @transform_6, window_bounds = array<i64: 128, 8>}, {pipeline_mode = #tpu.pipeline_mode<synchronous>, transform_indices = @transform_7, window_bounds = array<i64: 8, 128>}, {pipeline_mode = #tpu.pipeline_mode<synchronous>, transform_indices = @transform_8, window_bounds = array<i64: 64, 4>}, {pipeline_mode = #tpu.pipeline_mode<synchronous>, transform_indices = @transform_9, window_bounds = array<i64: 4, 64>}, {transform_indices = @transform_10, window_bounds = array<i64: 1, 16, 64>}]} {
    %c0 = arith.constant 0 : index
    %c0_0 = arith.constant 0 : index
    %c0_1 = arith.constant 0 : index
    %0 = vector.load %arg1[%c0, %c0_0, %c0_1] : memref<1x16x64xf32, #tpu.memory_space<vmem>>, vector<1x16x64xf32>
    %1 = vector.shape_cast %0 : vector<1x16x64xf32> to vector<16x64xf32>
    %c0_2 = arith.constant 0 : index
    %c0_3 = arith.constant 0 : index
    %c0_4 = arith.constant 0 : index
    %2 = vector.load %arg2[%c0_2, %c0_3, %c0_4] : memref<1x16x128xf32, #tpu.memory_space<vmem>>, vector<1x16x128xf32>
    %3 = vector.shape_cast %2 : vector<1x16x128xf32> to vector<16x128xf32>
    %4 = tpu.iota {dimensions = array<i32: 0>} : vector<16x1xi32>
    %c16_i32 = arith.constant 16 : i32
    %c0_i32 = arith.constant 0 : i32
    %5 = arith.cmpi eq, %c16_i32, %c0_i32 : i32
    %c1_i32 = arith.constant 1 : i32
    %6 = arith.select %5, %c1_i32, %c16_i32 : i32
    %7 = vector.broadcast %6 : i32 to vector<16x1xi32>
    %8 = arith.remsi %4, %7 : vector<16x1xi32>
    %c0_i32_5 = arith.constant 0 : i32
    %9 = vector.broadcast %c0_i32_5 : i32 to vector<16x1xi32>
    %10 = arith.cmpi ne, %8, %9 : vector<16x1xi32>
    %c0_i32_6 = arith.constant 0 : i32
    %11 = vector.broadcast %c0_i32_6 : i32 to vector<16x1xi32>
    %12 = arith.cmpi slt, %8, %11 : vector<16x1xi32>
    %c0_i32_7 = arith.constant 0 : i32
    %13 = arith.cmpi slt, %6, %c0_i32_7 : i32
    %14 = vector.broadcast %13 : i1 to vector<16x1xi1>
    %15 = vector.broadcast %14 : vector<16x1xi1> to vector<16x1xi1>
    %16 = arith.xori %12, %15 : vector<16x1xi1>
    %17 = arith.andi %16, %10 : vector<16x1xi1>
    %18 = vector.broadcast %6 : i32 to vector<16x1xi32>
    %19 = arith.addi %8, %18 : vector<16x1xi32>
    %20 = arith.select %17, %19, %8 : vector<16x1xi1>, vector<16x1xi32>
    %c0_i32_8 = arith.constant 0 : i32
    %21 = vector.broadcast %c0_i32_8 : i32 to vector<16x1xi32>
    %22 = arith.cmpi eq, %20, %21 : vector<16x1xi32>
    %c16_i32_9 = arith.constant 16 : i32
    %c0_i32_10 = arith.constant 0 : i32
    %23 = arith.cmpi eq, %c16_i32_9, %c0_i32_10 : i32
    %c1_i32_11 = arith.constant 1 : i32
    %24 = arith.select %23, %c1_i32_11, %c16_i32_9 : i32
    %25 = vector.broadcast %24 : i32 to vector<16x1xi32>
    %26 = arith.remsi %4, %25 : vector<16x1xi32>
    %c0_i32_12 = arith.constant 0 : i32
    %27 = vector.broadcast %c0_i32_12 : i32 to vector<16x1xi32>
    %28 = arith.cmpi ne, %26, %27 : vector<16x1xi32>
    %c0_i32_13 = arith.constant 0 : i32
    %29 = vector.broadcast %c0_i32_13 : i32 to vector<16x1xi32>
    %30 = arith.cmpi slt, %26, %29 : vector<16x1xi32>
    %c0_i32_14 = arith.constant 0 : i32
    %31 = arith.cmpi slt, %24, %c0_i32_14 : i32
    %32 = vector.broadcast %31 : i1 to vector<16x1xi1>
    %33 = vector.broadcast %32 : vector<16x1xi1> to vector<16x1xi1>
    %34 = arith.xori %30, %33 : vector<16x1xi1>
    %35 = arith.andi %34, %28 : vector<16x1xi1>
    %36 = vector.broadcast %24 : i32 to vector<16x1xi32>
    %37 = arith.addi %26, %36 : vector<16x1xi32>
    %38 = arith.select %35, %37, %26 : vector<16x1xi1>, vector<16x1xi32>
    %c15_i32 = arith.constant 15 : i32
    %39 = vector.broadcast %c15_i32 : i32 to vector<16x1xi32>
    %40 = arith.cmpi eq, %38, %39 : vector<16x1xi32>
    %41 = vector.extract_strided_slice %3 {offsets = [15, 0], sizes = [1, 128], strides = [1, 1]} : vector<16x128xf32> to vector<1x128xf32>
    %42 = vector.extract_strided_slice %3 {offsets = [0, 0], sizes = [15, 128], strides = [1, 1]} : vector<16x128xf32> to vector<15x128xf32>
    %43 = tpu.concatenate %41, %42 in 0 : vector<1x128xf32>, vector<15x128xf32> -> vector<16x128xf32>
    %44 = vector.extract_strided_slice %3 {offsets = [1, 0], sizes = [15, 128], strides = [1, 1]} : vector<16x128xf32> to vector<15x128xf32>
    %45 = vector.extract_strided_slice %3 {offsets = [0, 0], sizes = [1, 128], strides = [1, 1]} : vector<16x128xf32> to vector<1x128xf32>
    %46 = tpu.concatenate %44, %45 in 0 : vector<15x128xf32>, vector<1x128xf32> -> vector<16x128xf32>
    %cst = arith.constant 0.000000e+00 : f32
    %47 = vector.shape_cast %22 : vector<16x1xi1> to vector<16x1xi1>
    %48 = vector.broadcast %47 : vector<16x1xi1> to vector<16x128xi1>
    %49 = vector.broadcast %cst : f32 to vector<16x128xf32>
    %50 = arith.select %48, %49, %43 : vector<16x128xi1>, vector<16x128xf32>
    %cst_15 = arith.constant 0.000000e+00 : f32
    %51 = vector.shape_cast %40 : vector<16x1xi1> to vector<16x1xi1>
    %52 = vector.broadcast %51 : vector<16x1xi1> to vector<16x128xi1>
    %53 = vector.broadcast %cst_15 : f32 to vector<16x128xf32>
    %54 = arith.select %52, %53, %46 : vector<16x128xi1>, vector<16x128xf32>
    %55 = tpu.concatenate %50, %3, %54 in 1 : vector<16x128xf32>, vector<16x128xf32>, vector<16x128xf32> -> vector<16x384xf32>
    %c0_16 = arith.constant 0 : index
    %c0_17 = arith.constant 0 : index
    %56 = vector.load %arg3[%c0_16, %c0_17] : memref<384x64xf32, #tpu.memory_space<vmem>>, vector<384x64xf32>
    %cst_18 = arith.constant dense<0.000000e+00> : vector<16x64xf32>
    %57 = tpu.matmul %55, %56, %cst_18 {dimension_numbers = #tpu.dot_dimension_numbers<[1], [0], [0], [1], [0, 0, 1, 1], [], []>} : vector<16x384xf32>, vector<384x64xf32>, vector<16x64xf32> -> vector<16x64xf32>
    %c0_19 = arith.constant 0 : index
    %c0_20 = arith.constant 0 : index
    %58 = vector.load %arg6[%c0_19, %c0_20] : memref<1x64xf32, #tpu.memory_space<vmem>>, vector<1x64xf32>
    %59 = vector.broadcast %58 : vector<1x64xf32> to vector<16x64xf32>
    %60 = arith.addf %57, %59 : vector<16x64xf32>
    %cst_21 = arith.constant 0.000000e+00 : f32
    %61 = vector.broadcast %cst_21 : f32 to vector<16x64xf32>
    %62 = arith.maximumf %60, %61 : vector<16x64xf32>
    %63 = tpu.concatenate %1, %62 in 1 : vector<16x64xf32>, vector<16x64xf32> -> vector<16x128xf32>
    %64 = vector.extract_strided_slice %63 {offsets = [15, 0], sizes = [1, 128], strides = [1, 1]} : vector<16x128xf32> to vector<1x128xf32>
    %65 = vector.extract_strided_slice %63 {offsets = [0, 0], sizes = [15, 128], strides = [1, 1]} : vector<16x128xf32> to vector<15x128xf32>
    %66 = tpu.concatenate %64, %65 in 0 : vector<1x128xf32>, vector<15x128xf32> -> vector<16x128xf32>
    %67 = vector.extract_strided_slice %63 {offsets = [1, 0], sizes = [15, 128], strides = [1, 1]} : vector<16x128xf32> to vector<15x128xf32>
    %68 = vector.extract_strided_slice %63 {offsets = [0, 0], sizes = [1, 128], strides = [1, 1]} : vector<16x128xf32> to vector<1x128xf32>
    %69 = tpu.concatenate %67, %68 in 0 : vector<15x128xf32>, vector<1x128xf32> -> vector<16x128xf32>
    %70 = vector.shape_cast %22 : vector<16x1xi1> to vector<16x1xi1>
    %71 = vector.broadcast %70 : vector<16x1xi1> to vector<16x128xi1>
    %72 = arith.select %71, %69, %66 : vector<16x128xi1>, vector<16x128xf32>
    %73 = vector.shape_cast %40 : vector<16x1xi1> to vector<16x1xi1>
    %74 = vector.broadcast %73 : vector<16x1xi1> to vector<16x128xi1>
    %75 = arith.select %74, %66, %69 : vector<16x128xi1>, vector<16x128xf32>
    %76 = tpu.concatenate %72, %63, %75 in 1 : vector<16x128xf32>, vector<16x128xf32>, vector<16x128xf32> -> vector<16x384xf32>
    %c0_22 = arith.constant 0 : index
    %c0_23 = arith.constant 0 : index
    %77 = vector.load %arg4[%c0_22, %c0_23] : memref<384x128xf32, #tpu.memory_space<vmem>>, vector<384x128xf32>
    %cst_24 = arith.constant dense<0.000000e+00> : vector<16x128xf32>
    %78 = tpu.matmul %76, %77, %cst_24 {dimension_numbers = #tpu.dot_dimension_numbers<[1], [0], [0], [1], [0, 0, 1, 1], [], []>} : vector<16x384xf32>, vector<384x128xf32>, vector<16x128xf32> -> vector<16x128xf32>
    %cst_25 = arith.constant dense<0.000000e+00> : vector<128xf32>
    %79 = vector.multi_reduction <add>, %78, %cst_25 [0] : vector<16x128xf32> to vector<128xf32>
    %80 = vector.shape_cast %79 : vector<128xf32> to vector<1x128xf32>
    %81 = arith.mulf %78, %78 : vector<16x128xf32>
    %cst_26 = arith.constant dense<0.000000e+00> : vector<128xf32>
    %82 = vector.multi_reduction <add>, %81, %cst_26 [0] : vector<16x128xf32> to vector<128xf32>
    %83 = vector.shape_cast %82 : vector<128xf32> to vector<1x128xf32>
    %84 = tpu.concatenate %80, %83 in 0 : vector<1x128xf32>, vector<1x128xf32> -> vector<2x128xf32>
    %c0_27 = arith.constant 0 : index
    %c0_28 = arith.constant 0 : index
    %85 = vector.load %arg7[%c0_27, %c0_28] : memref<128x8xf32, #tpu.memory_space<vmem>>, vector<128x8xf32>
    %cst_29 = arith.constant dense<0.000000e+00> : vector<2x8xf32>
    %86 = tpu.matmul %84, %85, %cst_29 {dimension_numbers = #tpu.dot_dimension_numbers<[1], [0], [0], [1], [0, 0, 1, 1], [], []>} : vector<2x128xf32>, vector<128x8xf32>, vector<2x8xf32> -> vector<2x8xf32>
    %87 = vector.extract_strided_slice %86 {offsets = [0, 0], sizes = [1, 8], strides = [1, 1]} : vector<2x8xf32> to vector<1x8xf32>
    %88 = vector.extract_strided_slice %86 {offsets = [1, 0], sizes = [1, 8], strides = [1, 1]} : vector<2x8xf32> to vector<1x8xf32>
    %89 = arith.mulf %87, %87 : vector<1x8xf32>
    %90 = arith.subf %88, %89 : vector<1x8xf32>
    %cst_30 = arith.constant 9.99999974E-6 : f32
    %91 = vector.broadcast %cst_30 : f32 to vector<1x8xf32>
    %92 = arith.addf %90, %91 : vector<1x8xf32>
    %93 = math.rsqrt %92 : vector<1x8xf32>
    %cst_31 = arith.constant 0.000000e+00 : f32
    %94 = vector.broadcast %cst_31 : f32 to vector<1x8xf32>
    %95 = arith.subf %94, %87 : vector<1x8xf32>
    %96 = arith.mulf %95, %93 : vector<1x8xf32>
    %97 = tpu.concatenate %93, %96 in 0 : vector<1x8xf32>, vector<1x8xf32> -> vector<2x8xf32>
    %c0_32 = arith.constant 0 : index
    %c0_33 = arith.constant 0 : index
    %98 = vector.load %arg8[%c0_32, %c0_33] : memref<8x128xf32, #tpu.memory_space<vmem>>, vector<8x128xf32>
    %cst_34 = arith.constant dense<0.000000e+00> : vector<2x128xf32>
    %99 = tpu.matmul %97, %98, %cst_34 {dimension_numbers = #tpu.dot_dimension_numbers<[1], [0], [0], [1], [0, 0, 1, 1], [], []>} : vector<2x8xf32>, vector<8x128xf32>, vector<2x128xf32> -> vector<2x128xf32>
    %100 = vector.extract_strided_slice %99 {offsets = [0, 0], sizes = [1, 128], strides = [1, 1]} : vector<2x128xf32> to vector<1x128xf32>
    %101 = vector.broadcast %100 : vector<1x128xf32> to vector<16x128xf32>
    %102 = arith.mulf %78, %101 : vector<16x128xf32>
    %103 = vector.extract_strided_slice %99 {offsets = [1, 0], sizes = [1, 128], strides = [1, 1]} : vector<2x128xf32> to vector<1x128xf32>
    %104 = vector.broadcast %103 : vector<1x128xf32> to vector<16x128xf32>
    %105 = arith.addf %102, %104 : vector<16x128xf32>
    %cst_35 = arith.constant 0.000000e+00 : f32
    %106 = vector.broadcast %cst_35 : f32 to vector<16x128xf32>
    %107 = arith.maximumf %105, %106 : vector<16x128xf32>
    %108 = vector.extract_strided_slice %107 {offsets = [15, 0], sizes = [1, 128], strides = [1, 1]} : vector<16x128xf32> to vector<1x128xf32>
    %109 = vector.extract_strided_slice %107 {offsets = [0, 0], sizes = [15, 128], strides = [1, 1]} : vector<16x128xf32> to vector<15x128xf32>
    %110 = tpu.concatenate %108, %109 in 0 : vector<1x128xf32>, vector<15x128xf32> -> vector<16x128xf32>
    %111 = vector.extract_strided_slice %107 {offsets = [1, 0], sizes = [15, 128], strides = [1, 1]} : vector<16x128xf32> to vector<15x128xf32>
    %112 = vector.extract_strided_slice %107 {offsets = [0, 0], sizes = [1, 128], strides = [1, 1]} : vector<16x128xf32> to vector<1x128xf32>
    %113 = tpu.concatenate %111, %112 in 0 : vector<15x128xf32>, vector<1x128xf32> -> vector<16x128xf32>
    %114 = vector.shape_cast %22 : vector<16x1xi1> to vector<16x1xi1>
    %115 = vector.broadcast %114 : vector<16x1xi1> to vector<16x128xi1>
    %116 = arith.select %115, %113, %110 : vector<16x128xi1>, vector<16x128xf32>
    %117 = vector.shape_cast %40 : vector<16x1xi1> to vector<16x1xi1>
    %118 = vector.broadcast %117 : vector<16x1xi1> to vector<16x128xi1>
    %119 = arith.select %118, %110, %113 : vector<16x128xi1>, vector<16x128xf32>
    %120 = tpu.concatenate %116, %107, %119 in 1 : vector<16x128xf32>, vector<16x128xf32>, vector<16x128xf32> -> vector<16x384xf32>
    %c0_36 = arith.constant 0 : index
    %c0_37 = arith.constant 0 : index
    %121 = vector.load %arg5[%c0_36, %c0_37] : memref<384x64xf32, #tpu.memory_space<vmem>>, vector<384x64xf32>
    %cst_38 = arith.constant dense<0.000000e+00> : vector<16x64xf32>
    %122 = tpu.matmul %120, %121, %cst_38 {dimension_numbers = #tpu.dot_dimension_numbers<[1], [0], [0], [1], [0, 0, 1, 1], [], []>} : vector<16x384xf32>, vector<384x64xf32>, vector<16x64xf32> -> vector<16x64xf32>
    %cst_39 = arith.constant dense<0.000000e+00> : vector<64xf32>
    %123 = vector.multi_reduction <add>, %122, %cst_39 [0] : vector<16x64xf32> to vector<64xf32>
    %124 = vector.shape_cast %123 : vector<64xf32> to vector<1x64xf32>
    %125 = arith.mulf %122, %122 : vector<16x64xf32>
    %cst_40 = arith.constant dense<0.000000e+00> : vector<64xf32>
    %126 = vector.multi_reduction <add>, %125, %cst_40 [0] : vector<16x64xf32> to vector<64xf32>
    %127 = vector.shape_cast %126 : vector<64xf32> to vector<1x64xf32>
    %128 = tpu.concatenate %124, %127 in 0 : vector<1x64xf32>, vector<1x64xf32> -> vector<2x64xf32>
    %c0_41 = arith.constant 0 : index
    %c0_42 = arith.constant 0 : index
    %129 = vector.load %arg9[%c0_41, %c0_42] : memref<64x4xf32, #tpu.memory_space<vmem>>, vector<64x4xf32>
    %cst_43 = arith.constant dense<0.000000e+00> : vector<2x4xf32>
    %130 = tpu.matmul %128, %129, %cst_43 {dimension_numbers = #tpu.dot_dimension_numbers<[1], [0], [0], [1], [0, 0, 1, 1], [], []>} : vector<2x64xf32>, vector<64x4xf32>, vector<2x4xf32> -> vector<2x4xf32>
    %131 = vector.extract_strided_slice %130 {offsets = [0, 0], sizes = [1, 4], strides = [1, 1]} : vector<2x4xf32> to vector<1x4xf32>
    %132 = vector.extract_strided_slice %130 {offsets = [1, 0], sizes = [1, 4], strides = [1, 1]} : vector<2x4xf32> to vector<1x4xf32>
    %133 = arith.mulf %131, %131 : vector<1x4xf32>
    %134 = arith.subf %132, %133 : vector<1x4xf32>
    %cst_44 = arith.constant 9.99999974E-6 : f32
    %135 = vector.broadcast %cst_44 : f32 to vector<1x4xf32>
    %136 = arith.addf %134, %135 : vector<1x4xf32>
    %137 = math.rsqrt %136 : vector<1x4xf32>
    %cst_45 = arith.constant 0.000000e+00 : f32
    %138 = vector.broadcast %cst_45 : f32 to vector<1x4xf32>
    %139 = arith.subf %138, %131 : vector<1x4xf32>
    %140 = arith.mulf %139, %137 : vector<1x4xf32>
    %141 = tpu.concatenate %137, %140 in 0 : vector<1x4xf32>, vector<1x4xf32> -> vector<2x4xf32>
    %c0_46 = arith.constant 0 : index
    %c0_47 = arith.constant 0 : index
    %142 = vector.load %arg10[%c0_46, %c0_47] : memref<4x64xf32, #tpu.memory_space<vmem>>, vector<4x64xf32>
    %cst_48 = arith.constant dense<0.000000e+00> : vector<2x64xf32>
    %143 = tpu.matmul %141, %142, %cst_48 {dimension_numbers = #tpu.dot_dimension_numbers<[1], [0], [0], [1], [0, 0, 1, 1], [], []>} : vector<2x4xf32>, vector<4x64xf32>, vector<2x64xf32> -> vector<2x64xf32>
    %144 = vector.extract_strided_slice %143 {offsets = [0, 0], sizes = [1, 64], strides = [1, 1]} : vector<2x64xf32> to vector<1x64xf32>
    %145 = vector.broadcast %144 : vector<1x64xf32> to vector<16x64xf32>
    %146 = arith.mulf %122, %145 : vector<16x64xf32>
    %147 = vector.extract_strided_slice %143 {offsets = [1, 0], sizes = [1, 64], strides = [1, 1]} : vector<2x64xf32> to vector<1x64xf32>
    %148 = vector.broadcast %147 : vector<1x64xf32> to vector<16x64xf32>
    %149 = arith.addf %146, %148 : vector<16x64xf32>
    %150 = vector.shape_cast %149 : vector<16x64xf32> to vector<1x16x64xf32>
    %c0_49 = arith.constant 0 : index
    %c0_50 = arith.constant 0 : index
    %c0_51 = arith.constant 0 : index
    %151 = vector.load %arg11[%c0_49, %c0_50, %c0_51] : memref<1x16x64xf32, #tpu.memory_space<vmem>>, vector<1x16x64xf32>
    tpu.vector_store %arg11[%c0_49, %c0_50, %c0_51], %150 {strides = array<i32>} : memref<1x16x64xf32, #tpu.memory_space<vmem>>, vector<1x16x64xf32>,
    return
  }
  func.func @transform_0(%arg0: i32) -> (i32, i32, i32) {
    %c0_i32 = arith.constant 0 : i32
    %c0_i32_0 = arith.constant 0 : i32
    %c0_i32_1 = arith.constant 0 : i32
    return %arg0, %c0_i32, %c0_i32_0 : i32, i32, i32
  }
  func.func @transform_1(%arg0: i32) -> (i32, i32, i32) {
    %c0_i32 = arith.constant 0 : i32
    %c0_i32_0 = arith.constant 0 : i32
    %c0_i32_1 = arith.constant 0 : i32
    return %arg0, %c0_i32, %c0_i32_0 : i32, i32, i32
  }
  func.func @transform_2(%arg0: i32) -> (i32, i32) {
    %c0_i32 = arith.constant 0 : i32
    %c0_i32_0 = arith.constant 0 : i32
    %c0_i32_1 = arith.constant 0 : i32
    return %c0_i32, %c0_i32_0 : i32, i32
  }
  func.func @transform_3(%arg0: i32) -> (i32, i32) {
    %c0_i32 = arith.constant 0 : i32
    %c0_i32_0 = arith.constant 0 : i32
    %c0_i32_1 = arith.constant 0 : i32
    return %c0_i32, %c0_i32_0 : i32, i32
  }
  func.func @transform_4(%arg0: i32) -> (i32, i32) {
    %c0_i32 = arith.constant 0 : i32
    %c0_i32_0 = arith.constant 0 : i32
    %c0_i32_1 = arith.constant 0 : i32
    return %c0_i32, %c0_i32_0 : i32, i32
  }
  func.func @transform_5(%arg0: i32) -> (i32, i32) {
    %c0_i32 = arith.constant 0 : i32
    %c0_i32_0 = arith.constant 0 : i32
    %c0_i32_1 = arith.constant 0 : i32
    return %c0_i32, %c0_i32_0 : i32, i32
  }
  func.func @transform_6(%arg0: i32) -> (i32, i32) {
    %c0_i32 = arith.constant 0 : i32
    %c0_i32_0 = arith.constant 0 : i32
    %c0_i32_1 = arith.constant 0 : i32
    return %c0_i32, %c0_i32_0 : i32, i32
  }
  func.func @transform_7(%arg0: i32) -> (i32, i32) {
    %c0_i32 = arith.constant 0 : i32
    %c0_i32_0 = arith.constant 0 : i32
    %c0_i32_1 = arith.constant 0 : i32
    return %c0_i32, %c0_i32_0 : i32, i32
  }
  func.func @transform_8(%arg0: i32) -> (i32, i32) {
    %c0_i32 = arith.constant 0 : i32
    %c0_i32_0 = arith.constant 0 : i32
    %c0_i32_1 = arith.constant 0 : i32
    return %c0_i32, %c0_i32_0 : i32, i32
  }
  func.func @transform_9(%arg0: i32) -> (i32, i32) {
    %c0_i32 = arith.constant 0 : i32
    %c0_i32_0 = arith.constant 0 : i32
    %c0_i32_1 = arith.constant 0 : i32
    return %c0_i32, %c0_i32_0 : i32, i32
  }
  func.func @transform_10(%arg0: i32) -> (i32, i32, i32) {
    %c0_i32 = arith.constant 0 : i32
    %c0_i32_0 = arith.constant 0 : i32
    %c0_i32_1 = arith.constant 0 : i32
    return %arg0, %c0_i32, %c0_i32_0 : i32, i32, i32
  }
}

</mosaic_0001>

<bundles_post_ra>
// kernel: tile.8
= control target key start
LH: loop header
LB: loop body
LE: loop exit
PB: predicated region body
PF: predicated region fallthrough
CT: control target
= control target key end

     0   :  { %s28_s0 = inlined_call_operand.vmem [shape: f32[4], index: 0, kind: input, shape index: {}]   ;;  %s29_s1 = inlined_call_operand.vmem [shape: f32[16,4], index: 1, kind: output, shape index: {}]  }
   0x1   :  { %v4_v0 = vld [vmem:[%s28_s0] ss:$0 sm:$0xff] }
   0x2   :  { %5 = vst [vmem:[%s29_s1] sm:$0xff] %v4_v0  ;;  %8 = vst [vmem:[%s29_s1 + $0x8] sm:$0xff] %v4_v0 }

// kernel: tile.9
= control target key start
LH: loop header
LB: loop body
LE: loop exit
PB: predicated region body
PF: predicated region fallthrough
CT: control target
= control target key end

     0   :  { %s131_s10 = smov 60   ;;  %s132_s11 = smov 52   ;;  %vm3_vm0 = vcmask 31744   ;;  %vm9_vm1 = vcmask 523744   ;;  %vm15_vm2 = vcmask 490944   ;;  %vm21_vm3 = vcmask 458144   ;;  %s207_s0 = inlined_call_operand.vmem [shape: f32[16,4], index: 0, kind: input, shape index: {}]   ;;  %s208_s1 = inlined_call_operand.vmem [shape: f32[1,64], index: 1, kind: output, shape index: {}]  }
   0x1   :  { %v101_v0 = vld [vmem:[%s207_s0 + $0xf] sm:$0x1]   ;;  %v103_v1 = vld [vmem:[%s207_s0 + $0xd] sm:$0x1]   ;;  %v102_v2 = vld [vmem:[%s207_s0 + $0xe] sm:$0x1]  }
   0x2   :  { %7 = vrot.lane.b32.xlu0 %v101_v0, %s131_s10  ;;  %19 = vrot.lane.b32.xlu1 %v103_v1, %s132_s11  ;;  %v104_v3 = vld [vmem:[%s207_s0 + $0xc] sm:$0x1]   ;;  %s133_s16 = smov 56   ;;  %s134_s17 = smov 48   ;;  %v105_v4 = vld [vmem:[%s207_s0 + $0xb] sm:$0x1]  }
   0x3   :  { %v106_v5 = vld [vmem:[%s207_s0 + $0xa] sm:$0x1]   ;;  %v2_v6 = vld [vmem:[%s207_s0] sm:$0x1]   ;;  %s135_s24 = smov 44   ;;  %s136_s25 = smov 40  }
   0x4   :  { %4 = vst.msk [vmem:[#allocation0] sm:$0x1] %vm3_vm0, %v2_v6   ;;  %v107_v7 = vld [vmem:[%s207_s0 + $0x9] sm:$0x1]   ;;  %v108_v8 = vld [vmem:[%s207_s0 + $0x8] sm:$0x1]  }
   0x5   :  { %s137_s30 = smov 36   ;;  %s138_s2 = smov 32   ;;  %v109_v9 = vld [vmem:[%s207_s0 + $0x7] sm:$0x1]   ;;  %v110_v10 = vld [vmem:[%s207_s0 + $0x6] sm:$0x1]  }
   0x6   :  { %13 = vrot.lane.b32.xlu0 %v102_v2, %s133_s16  ;;  %25 = vrot.lane.b32.xlu1 %v104_v3, %s134_s17  ;;  %s139_s7 = smov 28   ;;  %s140_s8 = smov 24   ;;  %v111_v11 = vld [vmem:[%s207_s0 + $0x5] sm:$0x1]   ;;  %v112_v12 = vld [vmem:[%s207_s0 + $0x4] sm:$0x1]  }
   0x7   :  { %s141_s13 = smov 20   ;;  %s142_s14 = smov 16   ;;  %v113_v13 = vld [vmem:[%s207_s0 + $0x3] sm:$0x1]   ;;  %v114_v14 = vld [vmem:[%s207_s0 + $0x2] sm:$0x1]  }
   0x8   :  { %s143_s19 = smov 12   ;;  %s144_s20 = smov 8   ;;  %v115_v15 = vld [vmem:[%s207_s0 + $0x1] sm:$0x1]   ;;  %vm27_vm4 = vcmask 425344   ;;  %vm33_vm5 = vcmask 392544  }
   0x9   :  { %s145_s0 = smov 4   ;;  %vm39_vm6 = vcmask 359744   ;;  %vm45_vm7 = vcmask 326944   ;;  %vm51_vm8 = vcmask 294144   ;;  %vm57_vm9 = vcmask 261344  }
   0xa   :  { %31 = vrot.lane.b32.xlu0 %v105_v4, %s135_s24  ;;  %37 = vrot.lane.b32.xlu1 %v106_v5, %s136_s25  ;;  %vm63_vm10 = vcmask 228544   ;;  %vm69_vm11 = vcmask 195744   ;;  %vm75_vm12 = vcmask 162944   ;;  %vm81_vm13 = vcmask 130144  }
   0xb   :  { %vm87_vm14 = vcmask 97344   ;;  %vm93_vm15 = vcmask 64544  }
   0xe   :  { %43 = vrot.lane.b32.xlu0 %v107_v7, %s137_s30  ;;  %49 = vrot.lane.b32.xlu1 %v108_v8, %s138_s2 }
  0x12   :  { %55 = vrot.lane.b32.xlu0 %v109_v9, %s139_s7  ;;  %61 = vrot.lane.b32.xlu1 %v110_v10, %s140_s8 }
  0x16   :  { %67 = vrot.lane.b32.xlu0 %v111_v11, %s141_s13  ;;  %73 = vrot.lane.b32.xlu1 %v112_v12, %s142_s14 }
  0x1a   :  { %79 = vrot.lane.b32.xlu0 %v113_v13, %s143_s19  ;;  %85 = vrot.lane.b32.xlu1 %v114_v14, %s144_s20 }
  0x1e   :  { %91 = vrot.lane.b32.xlu0 %v115_v15, %s145_s0 }
  0x74   :  { %v8_v16 = vpop.permute.xlu0 %7   ;;  %v20_v17 = vpop.permute.xlu1 %19  }
  0x75   :  { %10 = vst.msk [vmem:[#allocation0] sm:$0x1] %vm9_vm1, %v8_v16  }
  0x78   :  { %v14_v18 = vpop.permute.xlu0 %13   ;;  %v26_v19 = vpop.permute.xlu1 %25  }
  0x79   :  { %16 = vst.msk [vmem:[#allocation0] sm:$0x1] %vm15_vm2, %v14_v18  }
  0x7a   :  { %22 = vst.msk [vmem:[#allocation0] sm:$0x1] %vm21_vm3, %v20_v17  }
  0x7b   :  { %28 = vst.msk [vmem:[#allocation0] sm:$0x1] %vm27_vm4, %v26_v19  }
  0x7c   :  { %v32_v20 = vpop.permute.xlu0 %31   ;;  %v38_v21 = vpop.permute.xlu1 %37  }
  0x7d   :  { %34 = vst.msk [vmem:[#allocation0] sm:$0x1] %vm33_vm5, %v32_v20  }
  0x7e   :  { %40 = vst.msk [vmem:[#allocation0] sm:$0x1] %vm39_vm6, %v38_v21  }
  0x80   :  { %v44_v22 = vpop.permute.xlu0 %43   ;;  %v50_v23 = vpop.permute.xlu1 %49  }
  0x81   :  { %46 = vst.msk [vmem:[#allocation0] sm:$0x1] %vm45_vm7, %v44_v22  }
  0x82   :  { %52 = vst.msk [vmem:[#allocation0] sm:$0x1] %vm51_vm8, %v50_v23  }
  0x84   :  { %v56_v24 = vpop.permute.xlu0 %55   ;;  %v62_v25 = vpop.permute.xlu1 %61  }
  0x85   :  { %58 = vst.msk [vmem:[#allocation0] sm:$0x1] %vm57_vm9, %v56_v24  }
  0x86   :  { %64 = vst.msk [vmem:[#allocation0] sm:$0x1] %vm63_vm10, %v62_v25  }
  0x88   :  { %v68_v26 = vpop.permute.xlu0 %67   ;;  %v74_v27 = vpop.permute.xlu1 %73  }
  0x89   :  { %70 = vst.msk [vmem:[#allocation0] sm:$0x1] %vm69_vm11, %v68_v26  }
  0x8a   :  { %76 = vst.msk [vmem:[#allocation0] sm:$0x1] %vm75_vm12, %v74_v27  }
  0x8c   :  { %v80_v28 = vpop.permute.xlu0 %79   ;;  %v86_v29 = vpop.permute.xlu1 %85  }
  0x8d   :  { %82 = vst.msk [vmem:[#allocation0] sm:$0x1] %vm81_vm13, %v80_v28  }
  0x8e   :  { %88 = vst.msk [vmem:[#allocation0] sm:$0x1] %vm87_vm14, %v86_v29  }
  0x90   :  { %v92_v30 = vpop.permute.xlu0 %91  }
  0x91   :  { %94 = vst.msk [vmem:[#allocation0] sm:$0x1] %vm93_vm15, %v92_v30  }
  0x98   :  { %v98_v31 = vld [vmem:[#allocation0] sm:$0x1] }
  0x99   :  { %100 = vst [vmem:[%s208_s1] sm:$0x1] %v98_v31 }

// kernel: transform_up_layer_forward.1
= control target key start
LH: loop header
LB: loop body
LE: loop exit
PB: predicated region body
PF: predicated region fallthrough
CT: control target
= control target key end

     0   :  { %s2293_s13 = smov 0   ;;  %s2944_s0 = inlined_call_operand.vmem [shape: f32[2,16,64], index: 0, kind: input, shape index: {}]   ;;  %s2945_s1 = inlined_call_operand.vmem [shape: f32[2,16,128], index: 1, kind: input, shape index: {}]   ;;  %s2946_s2 = inlined_call_operand.vmem [shape: f32[384,64], index: 2, kind: input, shape index: {}]   ;;  %s2947_s3 = inlined_call_operand.vmem [shape: f32[384,128], index: 3, kind: input, shape index: {}]   ;;  %s2948_s4 = inlined_call_operand.vmem [shape: f32[384,64], index: 4, kind: input, shape index: {}]   ;;  %s2949_s5 = inlined_call_operand.vmem [shape: f32[1,64], index: 5, kind: input, shape index: {}]   ;;  %s2950_s6 = inlined_call_operand.vmem [shape: f32[128,8], index: 6, kind: input, shape index: {}]   ;;  %s2951_s7 = inlined_call_operand.vmem [shape: f32[8,128], index: 7, kind: input, shape index: {}]   ;;  %s2952_s8 = inlined_call_operand.vmem [shape: f32[64,4], index: 8, kind: input, shape index: {}]   ;;  %s2953_s9 = inlined_call_operand.vmem [shape: f32[4,64], index: 9, kind: input, shape index: {}]   ;;  %s2954_s10 = inlined_call_operand.vmem [shape: f32[2,16,64], index: 10, kind: output, shape index: {}]  }
   0x1 LB: > { %s1585_s14 = sadd.s32 4294967295, %s2232_s13   ;;  %p1589_p0 = scmp.ge.s32.totalorder %s2232_s13, 1  ;;  %s2232_s13 = sphi %s2293_s13, %s20_s13  }
   0x2   : > { %p322_p1 = scmp.lt.s32.totalorder %s2232_s13, 3 }
   0x4   : > { %p323_p2 = pnand %p1589_p0, %p322_p1 }
   0x5   : > { %v461_v0 = vld [vmem:[%s2946_s2 + $0x80] sm:$0xff] (!%p323_p2)  ;;  %v462_v1 = vld [vmem:[%s2946_s2 + $0x88] sm:$0xff] (!%p323_p2)  ;;  %v463_v5 = vld [vmem:[%s2946_s2 + $0x90] sm:$0xff] (!%p323_p2)  ;;  %p2321_p3 = scmp.lt.s32.totalorder (!%p323_p2), %s1585_s14, 1  ;;  %vm425_vm0 = vcmask (!%p323_p2), 1046528   ;;  %v384_v55 = vlaneseq (!%p323_p2)  ;;  %vm419_vm2 = vcmask (!%p323_p2), 1040384  }
   0x6   : > { %326 = sbr.rel (%p323_p2) target bundleno = 1785 (0x6f9), region = 60  ;;  %v445_v2 = vld [vmem:[%s2946_s2] sm:$0xff] (!%p323_p2)  ;;  %v1977_v3 = vpack.c.bf16 (!%p323_p2), %v462_v1, %v461_v0  ;;  %v446_v4 = vld [vmem:[%s2946_s2 + $0x8] sm:$0xff] (!%p323_p2)  ;;  %v464_v6 = vld [vmem:[%s2946_s2 + $0x98] sm:$0xff] (!%p323_p2)  ;;  %s2235_s17 = smov (!%p323_p2), 64   ;;  %vm660_vm6 = vcmask (!%p323_p2), 523264  }
   0x7   : > { %v1979_v7 = vpack.c.bf16 (!%p323_p2), %v446_v4, %v445_v2  ;;  %v1981_v8 = vpack.c.bf16 (!%p323_p2), %v464_v6, %v463_v5  ;;  %v477_v9 = vld [vmem:[%s2946_s2 + $0x100] sm:$0xff] (!%p323_p2)  ;;  %v478_v10 = vld [vmem:[%s2946_s2 + $0x108] sm:$0xff] (!%p323_p2)  ;;  %v447_v11 = vld [vmem:[%s2946_s2 + $0x10] sm:$0xff] (!%p323_p2)  ;;  %vm2236_vm7 = vmmov (!%p323_p2), 0   ;;  %vm1001_vm8 = vcmask (!%p323_p2), 64512  }
   0x8   : > { %1978 = vmatprep.subr.bf16.mxu0 (!%p323_p2), %v1977_v3  ;;  %v2009_v12 = vpack.c.bf16 (!%p323_p2), %v478_v10, %v477_v9  ;;  %v448_v13 = vld [vmem:[%s2946_s2 + $0x18] sm:$0xff] (!%p323_p2)  ;;  %v465_v14 = vld [vmem:[%s2946_s2 + $0xa0] sm:$0xff] (!%p323_p2)  ;;  %v466_v15 = vld [vmem:[%s2946_s2 + $0xa8] sm:$0xff] (!%p323_p2)  ;;  %v2451_v3 = vshrl.u32 (!%p323_p2), %v384_v55, 7  ;;  %vm1430_vm9 = vcmask (!%p323_p2), 1043456   ;;  %vm1426_vm10 = vcmask (!%p323_p2), 31744  }
   0x9   : > { %1980 = vmatpush3.bf16.msra.mxu0 (!%p323_p2), %v1979_v7  ;;  %v1983_v16 = vpack.c.bf16 (!%p323_p2), %v448_v13, %v447_v11  ;;  %v479_v17 = vld [vmem:[%s2946_s2 + $0x110] sm:$0xff] (!%p323_p2)  ;;  %v480_v18 = vld [vmem:[%s2946_s2 + $0x118] sm:$0xff] (!%p323_p2)  ;;  %v1985_v19 = vpack.c.bf16 (!%p323_p2), %v466_v15, %v465_v14  ;;  %v449_v21 = vld [vmem:[%s2946_s2 + $0x20] sm:$0xff] (!%p323_p2) }
   0xa   : > { %1982 = vmatprep.subr.bf16.mxu0 (!%p323_p2), %v1981_v8  ;;  %2010 = vmatprep.subr.bf16.mxu1 (!%p323_p2), %v2009_v12  ;;  %v2013_v20 = vpack.c.bf16 (!%p323_p2), %v480_v18, %v479_v17  ;;  %v450_v22 = vld [vmem:[%s2946_s2 + $0x28] sm:$0xff] (!%p323_p2)  ;;  %v467_v23 = vld [vmem:[%s2946_s2 + $0xb0] sm:$0xff] (!%p323_p2)  ;;  %v468_v24 = vld [vmem:[%s2946_s2 + $0xb8] sm:$0xff] (!%p323_p2)  ;;  %v386_v7 = vadd.s32 (!%p323_p2), 8, %v2451_v3  ;;  %v391_v14 = vand.u32 (!%p323_p2), 15, %v2451_v3 }
   0xb   : > { %2012 = vmatpush3.bf16.msra.mxu1 (!%p323_p2), %v2009_v12  ;;  %v481_v25 = vld [vmem:[%s2946_s2 + $0x120] sm:$0xff] (!%p323_p2)  ;;  %v482_v26 = vld [vmem:[%s2946_s2 + $0x128] sm:$0xff] (!%p323_p2)  ;;  %v1987_v28 = vpack.c.bf16 (!%p323_p2), %v450_v22, %v449_v21  ;;  %v483_v29 = vld [vmem:[%s2946_s2 + $0x130] sm:$0xff] (!%p323_p2)  ;;  %v1989_v31 = vpack.c.bf16 (!%p323_p2), %v468_v24, %v467_v23 }
   0xc   : > { %2014 = vmatprep.subr.bf16.mxu1 (!%p323_p2), %v2013_v20  ;;  %v2017_v27 = vpack.c.bf16 (!%p323_p2), %v482_v26, %v481_v25  ;;  %v484_v30 = vld [vmem:[%s2946_s2 + $0x138] sm:$0xff] (!%p323_p2)  ;;  %v451_v32 = vld [vmem:[%s2946_s2 + $0x30] sm:$0xff] (!%p323_p2)  ;;  %v469_v34 = vld [vmem:[%s2946_s2 + $0xc0] sm:$0xff] (!%p323_p2)  ;;  %vm2475_vm1 = vcmp.eq.s32.totalorder (!%p323_p2), %v391_v14, 0 }
   0xd   : > { %s2961_s14 = smov (!%p2321_p3, %s1585_s14), 1  ;;  %1984 = vmatpush3.bf16.msra.mxu0 %v1983_v16  ;;  %v452_v33 = vld [vmem:[%s2946_s2 + $0x38] sm:$0xff]  ;;  %v470_v35 = vld [vmem:[%s2946_s2 + $0xc8] sm:$0xff]  ;;  %v2021_v36 = vpack.c.bf16 %v484_v30, %v483_v29  ;;  %v485_v38 = vld [vmem:[%s2946_s2 + $0x140] sm:$0xff]  ;;  %v398_v16 = vand.u32 15, %v386_v7 }
   0xe   : > { %1986 = vmatprep.subr.bf16.mxu0 %v1985_v19  ;;  %s2383_s29 = sshll.u32 %s2961_s14, 4  ;;  %v1991_v37 = vpack.c.bf16 %v452_v33, %v451_v32  ;;  %v486_v39 = vld [vmem:[%s2946_s2 + $0x148] sm:$0xff]  ;;  %v1993_v40 = vpack.c.bf16 %v470_v35, %v469_v34  ;;  %v453_v41 = vld [vmem:[%s2946_s2 + $0x40] sm:$0xff]  ;;  %v471_v43 = vld [vmem:[%s2946_s2 + $0xd0] sm:$0xff] }
   0xf   : > { %2016 = vmatpush3.bf16.msra.mxu1 %v2013_v20  ;;  %s374_s21 = scalar_lea.vmem %s2945_s1, %s2383_s29  ;;  %v454_v42 = vld [vmem:[%s2946_s2 + $0x48] sm:$0xff]  ;;  %v472_v44 = vld [vmem:[%s2946_s2 + $0xd8] sm:$0xff]  ;;  %v2025_v45 = vpack.c.bf16 %v486_v39, %v485_v38  ;;  %v487_v48 = vld [vmem:[%s2946_s2 + $0x150] sm:$0xff]  ;;  %vm2479_vm3 = vcmp.eq.s32.totalorder %v398_v16, 15  ;;  %s369_s19 = scalar_lea.vmem %s2944_s0, %s2383_s29 }
  0x10   : > { %2018 = vmatprep.subr.bf16.mxu1 %v2017_v27  ;;  %v2413_v46 = vld [vmem:[%s374_s21] sm:$0xff]  ;;  %v1995_v47 = vpack.c.bf16 %v454_v42, %v453_v41  ;;  %v488_v49 = vld [vmem:[%s2946_s2 + $0x158] sm:$0xff]  ;;  %v2421_v50 = vld [vmem:[%s374_s21 + $0x8] sm:$0xff]  ;;  %v1997_v52 = vpack.c.bf16 %v472_v44, %v471_v43  ;;  %s379_s25 = scalar_lea.vmem %s2954_s10, %s2383_s29 }
  0x11   : > { %1988 = vmatpush3.bf16.msra.mxu0 %v1987_v28  ;;  %v426_v51 = vrot.slane %v2413_v46, 1  ;;  %564 = vmatprep.mubr.f32.mxu0 %v2413_v46  ;;  %v455_v53 = vld [vmem:[%s2946_s2 + $0x50] sm:$0xff]  ;;  %v456_v54 = vld [vmem:[%s2946_s2 + $0x58] sm:$0xff]  ;;  %v427_v56 = vrot.slane %v2421_v50, 1  ;;  %v473_v57 = vld [vmem:[%s2946_s2 + $0xe0] sm:$0xff]  ;;  %v2029_v59 = vpack.c.bf16 %v488_v49, %v487_v48  ;;  %v416_v18 = vrot.slane %v2421_v50, 7 }
  0x12   : > { %1990 = vmatprep.subr.bf16.mxu0 %v1989_v31  ;;  %v474_v58 = vld [vmem:[%s2946_s2 + $0xe8] sm:$0xff]  ;;  %v1999_v61 = vpack.c.bf16 %v456_v54, %v455_v53  ;;  %v489_v62 = vld [vmem:[%s2946_s2 + $0x160] sm:$0xff]  ;;  %v475_v4 = vld [vmem:[%s2946_s2 + $0xf0] sm:$0xff]  ;;  %v420_v19 = vrot.slane %v2413_v46, 7 }
  0x13   : > { %2020 = vmatpush3.bf16.msra.mxu1 %v2017_v27  ;;  %v428_v60 = vsel %vm425_vm0, %v426_v51, %v427_v56  ;;  %v490_v63 = vld [vmem:[%s2946_s2 + $0x168] sm:$0xff]  ;;  %v2001_v0 = vpack.c.bf16 %v474_v58, %v473_v57  ;;  %v457_v1 = vld [vmem:[%s2946_s2 + $0x60] sm:$0xff]  ;;  %v476_v5 = vld [vmem:[%s2946_s2 + $0xf8] sm:$0xff]  ;;  %v432_v23 = vsel %vm425_vm0, %v427_v56, %v426_v51 }
  0x14   : > { %2022 = vmatprep.subr.bf16.mxu1 %v2021_v36  ;;  %1840 = vmatprep.mubr.f32.mxu1 %v428_v60  ;;  %v458_v2 = vld [vmem:[%s2946_s2 + $0x68] sm:$0xff]  ;;  %v2033_v6 = vpack.c.bf16 %v490_v63, %v489_v62  ;;  %v491_v9 = vld [vmem:[%s2946_s2 + $0x170] sm:$0xff]  ;;  %v492_v10 = vld [vmem:[%s2946_s2 + $0x178] sm:$0xff]  ;;  %v2005_v11 = vpack.c.bf16 %v476_v5, %v475_v4  ;;  %v424_v22 = vsel %vm419_vm2, %v416_v18, %v420_v19 }
  0x15   : > { %1992 = vmatpush3.bf16.msra.mxu0 %v1991_v37  ;;  %v2003_v8 = vpack.c.bf16 %v458_v2, %v457_v1  ;;  %v459_v12 = vld [vmem:[%s2946_s2 + $0x70] sm:$0xff]  ;;  %v460_v13 = vld [vmem:[%s2946_s2 + $0x78] sm:$0xff]  ;;  %v2037_v15 = vpack.c.bf16 %v492_v10, %v491_v9  ;;  %vm1597_vm4 = vmneg %vm2475_vm1  ;;  %v421_v24 = vsel %vm419_vm2, %v420_v19, %v416_v18 }
  0x16   : > { %1994 = vmatprep.subr.bf16.mxu0 %v1993_v40  ;;  %v2007_v17 = vpack.c.bf16 %v460_v13, %v459_v12  ;;  %vm1599_vm5 = vmneg %vm2479_vm3  ;;  %v699_v25 = vld [vmem:[%s2947_s3 + $0x80] sm:$0xff]  ;;  %v700_v26 = vld [vmem:[%s2947_s3 + $0x88] sm:$0xff] }
  0x17   : > { %2024 = vmatpush3.bf16.msra.mxu1 %v2021_v36  ;;  %v715_v27 = vld [vmem:[%s2947_s3 + $0x100] sm:$0xff]  ;;  %v2041_v28 = vpack.c.bf16 %v700_v26, %v699_v25  ;;  %v716_v29 = vld [vmem:[%s2947_s3 + $0x108] sm:$0xff]  ;;  %v701_v34 = vld [vmem:[%s2947_s3 + $0x90] sm:$0xff] }
  0x18   : > { %2026 = vmatprep.subr.bf16.mxu1 %v2025_v45  ;;  %v683_v30 = vld [vmem:[%s2947_s3] sm:$0xff]  ;;  %v684_v31 = vld [vmem:[%s2947_s3 + $0x8] sm:$0xff]  ;;  %v2073_v32 = vpack.c.bf16 %v716_v29, %v715_v27  ;;  %v702_v35 = vld [vmem:[%s2947_s3 + $0x98] sm:$0xff] }
  0x19   : > { %1996 = vmatpush3.bf16.msra.mxu0 %v1995_v47  ;;  %v2043_v33 = vpack.c.bf16 %v684_v31, %v683_v30  ;;  %v717_v36 = vld [vmem:[%s2947_s3 + $0x110] sm:$0xff]  ;;  %v2045_v37 = vpack.c.bf16 %v702_v35, %v701_v34  ;;  %v718_v38 = vld [vmem:[%s2947_s3 + $0x118] sm:$0xff]  ;;  %v703_v43 = vld [vmem:[%s2947_s3 + $0xa0] sm:$0xff] }
  0x1a   : > { %1998 = vmatprep.subr.bf16.mxu0 %v1997_v52  ;;  %v685_v39 = vld [vmem:[%s2947_s3 + $0x10] sm:$0xff]  ;;  %v686_v40 = vld [vmem:[%s2947_s3 + $0x18] sm:$0xff]  ;;  %v2077_v41 = vpack.c.bf16 %v718_v38, %v717_v36  ;;  %v704_v44 = vld [vmem:[%s2947_s3 + $0xa8] sm:$0xff] }
  0x1b   : > { %2028 = vmatpush3.bf16.msra.mxu1 %v2025_v45  ;;  %v2047_v42 = vpack.c.bf16 %v686_v40, %v685_v39  ;;  %v719_v45 = vld [vmem:[%s2947_s3 + $0x120] sm:$0xff]  ;;  %v2049_v46 = vpack.c.bf16 %v704_v44, %v703_v43  ;;  %v720_v47 = vld [vmem:[%s2947_s3 + $0x128] sm:$0xff]  ;;  %v705_v51 = vld [vmem:[%s2947_s3 + $0xb0] sm:$0xff] }
  0x1c   : > { %2030 = vmatprep.subr.bf16.mxu1 %v2029_v59  ;;  %v687_v48 = vld [vmem:[%s2947_s3 + $0x20] sm:$0xff]  ;;  %v688_v49 = vld [vmem:[%s2947_s3 + $0x28] sm:$0xff]  ;;  %v706_v52 = vld [vmem:[%s2947_s3 + $0xb8] sm:$0xff] }
  0x1d   : > { %2000 = vmatpush3.bf16.msra.mxu0 %v1999_v61  ;;  %v721_v53 = vld [vmem:[%s2947_s3 + $0x130] sm:$0xff]  ;;  %v722_v54 = vld [vmem:[%s2947_s3 + $0x138] sm:$0xff]  ;;  %v2051_v55 = vpack.c.bf16 %v688_v49, %v687_v48  ;;  %v2053_v56 = vpack.c.bf16 %v706_v52, %v705_v51  ;;  %v707_v60 = vld [vmem:[%s2947_s3 + $0xc0] sm:$0xff]  ;;  %v2234_v52 = vmov 0.0|0.0  }
  0x1e   : > { %2002 = vmatprep.subr.bf16.mxu0 %v2001_v0  ;;  %v689_v57 = vld [vmem:[%s2947_s3 + $0x30] sm:$0xff]  ;;  %v690_v58 = vld [vmem:[%s2947_s3 + $0x38] sm:$0xff]  ;;  %v708_v61 = vld [vmem:[%s2947_s3 + $0xc8] sm:$0xff] }
  0x1f   : > { %2032 = vmatpush3.bf16.msra.mxu1 %v2029_v59  ;;  %v2085_v59 = vpack.c.bf16 %v722_v54, %v721_v53  ;;  %v723_v62 = vld [vmem:[%s2947_s3 + $0x140] sm:$0xff]  ;;  %v724_v63 = vld [vmem:[%s2947_s3 + $0x148] sm:$0xff]  ;;  %v2055_v0 = vpack.c.bf16 %v690_v58, %v689_v57  ;;  %v2057_v1 = vpack.c.bf16 %v708_v61, %v707_v60  ;;  %v710_v7 = vld [vmem:[%s2947_s3 + $0xd8] sm:$0xff] }
  0x20   : > { %2034 = vmatprep.subr.bf16.mxu1 %v2033_v6  ;;  %v691_v2 = vld [vmem:[%s2947_s3 + $0x40] sm:$0xff]  ;;  %v692_v4 = vld [vmem:[%s2947_s3 + $0x48] sm:$0xff]  ;;  %v2089_v5 = vpack.c.bf16 %v724_v63, %v723_v62  ;;  %v726_v9 = vld [vmem:[%s2947_s3 + $0x158] sm:$0xff] }
  0x21   : > { %2004 = vmatpush3.bf16.msra.mxu0 %v2003_v8  ;;  %v725_v8 = vld [vmem:[%s2947_s3 + $0x150] sm:$0xff]  ;;  %v2059_v10 = vpack.c.bf16 %v692_v4, %v691_v2  ;;  %v694_v13 = vld [vmem:[%s2947_s3 + $0x58] sm:$0xff]  ;;  %v712_v16 = vld [vmem:[%s2947_s3 + $0xe8] sm:$0xff] }
  0x22   : > { %2006 = vmatprep.subr.bf16.mxu0 %v2005_v11  ;;  %v693_v12 = vld [vmem:[%s2947_s3 + $0x50] sm:$0xff]  ;;  %v2093_v14 = vpack.c.bf16 %v726_v9, %v725_v8  ;;  %v728_v18 = vld [vmem:[%s2947_s3 + $0x168] sm:$0xff]  ;;  %v695_v25 = vld [vmem:[%s2947_s3 + $0x60] sm:$0xff] }
  0x23   : > { %2036 = vmatpush3.bf16.msra.mxu1 %v2033_v6  ;;  %v709_v6 = vld [vmem:[%s2947_s3 + $0xd0] sm:$0xff]  ;;  %v2063_v19 = vpack.c.bf16 %v694_v13, %v693_v12  ;;  %v696_v26 = vld [vmem:[%s2947_s3 + $0x68] sm:$0xff]  ;;  %v714_v34 = vld [vmem:[%s2947_s3 + $0xf8] sm:$0xff] }
  0x24   : > { %2038 = vmatprep.subr.bf16.mxu1 %v2037_v15  ;;  %v2061_v11 = vpack.c.bf16 %v710_v7, %v709_v6  ;;  %v2067_v29 = vpack.c.bf16 %v696_v26, %v695_v25  ;;  %v729_v35 = vld [vmem:[%s2947_s3 + $0x170] sm:$0xff]  ;;  %v730_v39 = vld [vmem:[%s2947_s3 + $0x178] sm:$0xff]  ;;  %v381_v54 = vld [vmem:[%s369_s19 + $0x8] sm:$0xff] }
  0x25   : > { %2008 = vmatpush3.bf16.msra.mxu0 %v2007_v17  ;;  %v727_v17 = vld [vmem:[%s2947_s3 + $0x160] sm:$0xff]  ;;  %v698_v43 = vld [vmem:[%s2947_s3 + $0x78] sm:$0xff]  ;;  %v1330_v21 = vld [vmem:[%s2952_s8 + $0x10] sm:$0xff] }
  0x26   : > { %2042 = vmatprep.subr.bf16.mxu0 %v2041_v28  ;;  %v1596_v28 = vld [vmem:[%s2949_s5] ss:$0 sm:$0xff]  ;;  %v909_v25 = vld [vmem:[%s2950_s6 + $0x58] sm:$0xff] }
  0x27   : > { %2040 = vmatpush3.bf16.msra.mxu1 %v2037_v15  ;;  %v711_v15 = vld [vmem:[%s2947_s3 + $0xe0] sm:$0xff] }
  0x28   : > { %1598 = vmatmul.mubr.msk.f32.vlgmr.msra.gmra.mrb[0].mxu0 %vm1597_vm4, %v424_v22  ;;  %2074 = vmatprep.subr.bf16.mxu1 %v2073_v32  ;;  %v2065_v22 = vpack.c.bf16 %v712_v16, %v711_v15  ;;  %v898_v58 = vld [vmem:[%s2950_s6] sm:$0xff]  ;;  %v904_v16 = vld [vmem:[%s2950_s6 + $0x30] sm:$0xff] }
  0x29   : > { %569 = vmatprep.mubr.f32.mxu0 %v2421_v50  ;;  %2044 = vmatpush3.bf16.msra.mxu0 %v2043_v33  ;;  %v2081_v50 = vpack.c.bf16 %v720_v47, %v719_v45  ;;  %v713_v33 = vld [vmem:[%s2947_s3 + $0xf0] sm:$0xff]  ;;  %v902_v13 = vld [vmem:[%s2950_s6 + $0x20] sm:$0xff] }
  0x2a   : > { %1841 = vmatmul.mubr.msk.f32.vlgmr.msra.gmra.mrb[0].mxu1 %vm1599_vm5, %v432_v23  ;;  %2046 = vmatprep.subr.bf16.mxu0 %v2045_v37  ;;  %v2097_v23 = vpack.c.bf16 %v728_v18, %v727_v17  ;;  %v2069_v38 = vpack.c.bf16 %v714_v34, %v713_v33  ;;  %v905_v17 = vld [vmem:[%s2950_s6 + $0x38] sm:$0xff] }
  0x2b   : > { %2076 = vmatpush3.bf16.msra.mxu1 %v2073_v32  ;;  %v2115_v18 = vpack.c.bf16 %v905_v17, %v904_v16  ;;  %v1150_v16 = vld [vmem:[%s2948_s4 + $0x148] sm:$0xff] }
  0x2c   : > { %570 = vmatmul.mubr.f32.gmra.mrb[2].mxu0 %v421_v24  ;;  %2078 = vmatprep.subr.bf16.mxu1 %v2077_v41 }
  0x2d   : > { %2048 = vmatpush3.bf16.msra.mxu0 %v2047_v42  ;;  %v697_v42 = vld [vmem:[%s2947_s3 + $0x70] sm:$0xff] }
  0x2e   : > { %2050 = vmatprep.subr.bf16.mxu0 %v2049_v46  ;;  %v2071_v46 = vpack.c.bf16 %v698_v43, %v697_v42 }
  0x2f   : > { %2080 = vmatpush3.bf16.msra.mxu1 %v2077_v41  ;;  %v2101_v41 = vpack.c.bf16 %v730_v39, %v729_v35 }
  0x30   : > { %2082 = vmatprep.subr.bf16.mxu1 %v2081_v50 }
  0x31   : > { %2052 = vmatpush3.bf16.msra.mxu0 %v2051_v55  ;;  %v380_v55 = vld [vmem:[%s369_s19] sm:$0xff] }
  0x32   : > { %2054 = vmatprep.subr.bf16.mxu0 %v2053_v56 }
  0x33   : > { %2084 = vmatpush3.bf16.msra.mxu1 %v2081_v50 }
  0x34   : > { %2086 = vmatprep.subr.bf16.mxu1 %v2085_v59 }
  0x35   : > { %2056 = vmatpush3.bf16.msra.mxu0 %v2055_v0 }
  0x36   : > { %2058 = vmatprep.subr.bf16.mxu0 %v2057_v1 }
  0x37   : > { %2088 = vmatpush3.bf16.msra.mxu1 %v2085_v59  ;;  %v899_v59 = vld [vmem:[%s2950_s6 + $0x8] sm:$0xff] }
  0x38   : > { %2090 = vmatprep.subr.bf16.mxu1 %v2089_v5  ;;  %v2106_v2 = vpack.c.bf16 %v899_v59, %v898_v58 }
  0x39   : > { %2060 = vmatpush3.bf16.msra.mxu0 %v2059_v10  ;;  %v900_v10 = vld [vmem:[%s2950_s6 + $0x10] sm:$0xff] }
  0x3a   : > { %2062 = vmatprep.subr.bf16.mxu0 %v2061_v11  ;;  %v901_v11 = vld [vmem:[%s2950_s6 + $0x18] sm:$0xff] }
  0x3b   : > { %2092 = vmatpush3.bf16.msra.mxu1 %v2089_v5  ;;  %v2109_v12 = vpack.c.bf16 %v901_v11, %v900_v10  ;;  %v1146_v10 = vld [vmem:[%s2948_s4 + $0x128] sm:$0xff] }
  0x3c   : > { %2094 = vmatprep.subr.bf16.mxu1 %v2093_v14 }
  0x3d   : > { %2064 = vmatpush3.bf16.msra.mxu0 %v2063_v19  ;;  %v906_v19 = vld [vmem:[%s2950_s6 + $0x40] sm:$0xff] }
  0x3e   : > { %2066 = vmatprep.subr.bf16.mxu0 %v2065_v22  ;;  %v907_v22 = vld [vmem:[%s2950_s6 + $0x48] sm:$0xff] }
  0x3f   : > { %2096 = vmatpush3.bf16.msra.mxu1 %v2093_v14  ;;  %v903_v14 = vld [vmem:[%s2950_s6 + $0x28] sm:$0xff] }
  0x40   : > { %2098 = vmatprep.subr.bf16.mxu1 %v2097_v23  ;;  %v2112_v15 = vpack.c.bf16 %v903_v14, %v902_v13  ;;  %v1148_v13 = vld [vmem:[%s2948_s4 + $0x138] sm:$0xff] }
  0x41   : > { %2068 = vmatpush3.bf16.msra.mxu0 %v2067_v29 }
  0x42   : > { %2070 = vmatprep.subr.bf16.mxu0 %v2069_v38 }
  0x43   : > { %2100 = vmatpush3.bf16.msra.mxu1 %v2097_v23  ;;  %v2118_v23 = vpack.c.bf16 %v907_v22, %v906_v19 }
  0x44   : > { %2102 = vmatprep.subr.bf16.mxu1 %v2101_v41 }
  0x45   : > { %2072 = vmatpush3.bf16.msra.mxu0 %v2071_v46 }
  0x46   : > { %2105 = vmatprep.subr.bf16.mxu0 %v2234_v52 }
  0x47   : > { %2104 = vmatpush3.bf16.msra.mxu1 %v2101_v41 }
  0xfb   : > { %v1642_v24 = vpop.f32.mrb[0].mxu0 }
  0xfc   : > { %v1643_v27 = vpop.f32.mrb[1].mxu0 }
  0xfd   : > { %v1644_v30 = vadd.f32 %v1643_v27, %v1642_v24  ;;  %v1842_v31 = vpop.f32.mrb[0].mxu1  ;;  %v908_v24 = vld [vmem:[%s2950_s6 + $0x50] sm:$0xff]  ;;  %v910_v27 = vld [vmem:[%s2950_s6 + $0x60] sm:$0xff] }
  0xfe   : > { %v641_v32 = vpop.f32.mrb[1].mxu1  ;;  %v2121_v26 = vpack.c.bf16 %v909_v25, %v908_v24 }
  0xff   : > { %v1645_v36 = vpop.f32.mrb[2].mxu0  ;;  %v567_v37 = vadd.f32 %v1644_v30, %v1596_v28  ;;  %v912_v30 = vld [vmem:[%s2950_s6 + $0x70] sm:$0xff] }
 0x100   : > { %v1646_v40 = vpop.f32.mrb[3].mxu0 }
 0x101   : > { %v1647_v44 = vadd.f32 %v1646_v40, %v1645_v36  ;;  %v642_v45 = vadd.f32 %v641_v32, %v567_v37  ;;  %v2237_v32 = vmov 0.0  }
 0x102   : > { %1913 = vmatprep.subr.mxu1 %v2237_v32 }
 0x103   : > { %v572_v47 = vadd.f32 %v1647_v44, %v1596_v28  ;;  %v650_v49 = vmax.f32 %v642_v45, 0.0  ;;  %v911_v28 = vld [vmem:[%s2950_s6 + $0x68] sm:$0xff] }
 0x104   : > { %v2124_v29 = vpack.c.bf16 %v911_v28, %v910_v27 }
 0x105   : > { %v647_v48 = vadd.f32 %v1842_v31, %v572_v47  ;;  %v913_v31 = vld [vmem:[%s2950_s6 + $0x78] sm:$0xff] }
 0x106   : > { %v2127_v33 = vpack.c.bf16 %v913_v31, %v912_v30  ;;  %v1110_v30 = vld [vmem:[%s2948_s4 + $0x8] sm:$0xff] }
 0x107   : > { %v651_v50 = vmax.f32 %v647_v48, 0.0 }
 0x109   : > { %v2217_v51 = vpack.i.bf16 %v651_v50, %v650_v49 }
 0x10b   : > { %2218 = vrot.lane.b32.xlu0 %v2217_v51, %s2235_s17 }
 0x17d   : > { %v2219_v53 = vpop.permute.xlu0 %2218 }
 0x17e   : > { %v2221_v56 = vunpack.i.h.bf16 %v2219_v53  ;;  %v2220_v57 = vunpack.i.l.bf16 %v2219_v53 }
 0x180   : > { %v662_v60 = vsel %vm660_vm6, %v381_v54, %v2221_v56  ;;  %v661_v61 = vsel %vm660_vm6, %v380_v55, %v2220_v57 }
 0x181   : > { %v664_v62 = vrot.slane %v662_v60, 7  ;;  %v667_v63 = vrot.slane %v661_v61, 7  ;;  %v672_v0 = vrot.slane %v661_v61, 1  ;;  %795 = vmatprep.mubr.f32.mxu0 %v661_v61  ;;  %v673_v1 = vrot.slane %v662_v60, 1 }
 0x183   : > { %v671_v4 = vsel %vm419_vm2, %v664_v62, %v667_v63  ;;  %v674_v5 = vsel %vm425_vm0, %v672_v0, %v673_v1  ;;  %v668_v6 = vsel %vm419_vm2, %v667_v63, %v664_v62  ;;  %v678_v7 = vsel %vm425_vm0, %v673_v1, %v672_v0  ;;  %v1000_v62 = vld [vmem:[%s2951_s7] sm:$0xff]  ;;  %v1126_v0 = vld [vmem:[%s2948_s4 + $0x88] sm:$0xff] }
 0x184   : > { %v679_v8 = vsel %vm2475_vm1, %v674_v5, %v671_v4  ;;  %1875 = vmatprep.mubr.f32.mxu1 %v674_v5  ;;  %v682_v9 = vsel %vm2479_vm3, %v668_v6, %v678_v7  ;;  %v1125_v63 = vld [vmem:[%s2948_s4 + $0x80] sm:$0xff]  ;;  %v1142_v4 = vld [vmem:[%s2948_s4 + $0x108] sm:$0xff]  ;;  %v1144_v7 = vld [vmem:[%s2948_s4 + $0x118] sm:$0xff] }
 0x185   : > { %796 = vmatmul.mubr.f32.vlgmr.msra.gmra.mrb[4].mxu0 %v679_v8  ;;  %1876 = vmatmul.mubr.f32.vlgmr.msra.gmra.mrb[2].mxu1 %v682_v9  ;;  %v1141_v1 = vld [vmem:[%s2948_s4 + $0x100] sm:$0xff] }
 0x186   : > { %800 = vmatprep.mubr.f32.mxu0 %v662_v60  ;;  %2107 = vmatpush3.bf16.msra.mxu0 %v2106_v2  ;;  %v2129_v2 = vpack.c.bf16 %v1126_v0, %v1125_v63  ;;  %v2161_v5 = vpack.c.bf16 %v1142_v4, %v1141_v1  ;;  %v1145_v9 = vld [vmem:[%s2948_s4 + $0x120] sm:$0xff]  ;;  %v1135_v63 = vld [vmem:[%s2948_s4 + $0xd0] sm:$0xff]  ;;  %v1136_v0 = vld [vmem:[%s2948_s4 + $0xd8] sm:$0xff] }
 0x187   : > { %2108 = vmatprep.subr.bf16.mxu0 %v2234_v52  ;;  %1915 = vmatprep.mubr.msk.f32.mxu1 %vm2236_vm7, %v2237_v32  ;;  %v2169_v11 = vpack.c.bf16 %v1146_v10, %v1145_v9  ;;  %v1151_v1 = vld [vmem:[%s2948_s4 + $0x150] sm:$0xff]  ;;  %v1152_v4 = vld [vmem:[%s2948_s4 + $0x158] sm:$0xff]  ;;  %v1137_v9 = vld [vmem:[%s2948_s4 + $0xe0] sm:$0xff] }
 0x188   : > { %1914 = vmatpush3.msra.mxu1 %v1000_v62  ;;  %v1138_v10 = vld [vmem:[%s2948_s4 + $0xe8] sm:$0xff] }
 0x189   : > { %801 = vmatmul.mubr.f32.gmra.mrb[6].mxu0 %v668_v6  ;;  %v1143_v6 = vld [vmem:[%s2948_s4 + $0x110] sm:$0xff]  ;;  %2130 = vmatprep.subr.bf16.mxu1 %v2129_v2  ;;  %v2149_v2 = vpack.c.bf16 %v1136_v0, %v1135_v63 }
 0x18a   : > { %2110 = vmatpush3.bf16.msra.mxu0 %v2109_v12  ;;  %1910 = vmatprep.mubr.msk.f32.mxu0 %vm2236_vm7, %v2237_v32  ;;  %v2165_v8 = vpack.c.bf16 %v1144_v7, %v1143_v6  ;;  %v1147_v12 = vld [vmem:[%s2948_s4 + $0x130] sm:$0xff]  ;;  %v1120_v6 = vld [vmem:[%s2948_s4 + $0x58] sm:$0xff]  ;;  %v2181_v7 = vpack.c.bf16 %v1152_v4, %v1151_v1 }
 0x18b   : > { %2111 = vmatprep.subr.bf16.mxu0 %v2234_v52  ;;  %v2173_v14 = vpack.c.bf16 %v1148_v13, %v1147_v12  ;;  %v2153_v12 = vpack.c.bf16 %v1138_v10, %v1137_v9  ;;  %v1154_v13 = vld [vmem:[%s2948_s4 + $0x168] sm:$0xff] }
 0x18e   : > { %2113 = vmatpush3.bf16.msra.mxu0 %v2112_v15  ;;  %v1149_v15 = vld [vmem:[%s2948_s4 + $0x140] sm:$0xff] }
 0x18f   : > { %2114 = vmatprep.subr.bf16.mxu0 %v2234_v52  ;;  %v2177_v17 = vpack.c.bf16 %v1150_v16, %v1149_v15  ;;  %v1122_v15 = vld [vmem:[%s2948_s4 + $0x68] sm:$0xff] }
 0x192   : > { %2116 = vmatpush3.bf16.msra.mxu0 %v2115_v18 }
 0x193   : > { %2117 = vmatprep.subr.bf16.mxu0 %v2234_v52 }
 0x196   : > { %2119 = vmatpush3.bf16.msra.mxu0 %v2118_v23 }
 0x197   : > { %2120 = vmatprep.subr.bf16.mxu0 %v2234_v52 }
 0x19a   : > { %2122 = vmatpush3.bf16.msra.mxu0 %v2121_v26 }
 0x19b   : > { %2123 = vmatprep.subr.bf16.mxu0 %v2234_v52 }
 0x19e   : > { %2125 = vmatpush3.bf16.msra.mxu0 %v2124_v29  ;;  %v1109_v29 = vld [vmem:[%s2948_s4] sm:$0xff] }
 0x19f   : > { %2126 = vmatprep.subr.bf16.mxu0 %v2234_v52 }
 0x1a2   : > { %2128 = vmatpush3.bf16.msra.mxu0 %v2127_v33  ;;  %v1127_v33 = vld [vmem:[%s2948_s4 + $0x90] sm:$0xff] }
 0x1a3   : > { %2162 = vmatprep.subr.bf16.mxu0 %v2161_v5 }
 0x258   : > { %v1698_v34 = vpop.f32.mrb[4].mxu0  ;;  %v1877_v35 = vpop.f32.mrb[2].mxu1 }
 0x259   : > { %v1699_v36 = vpop.f32.mrb[5].mxu0  ;;  %v872_v37 = vpop.f32.mrb[3].mxu1 }
 0x25a   : > { %v1700_v38 = vadd.f32 %v1699_v36, %v1698_v34  ;;  %v1128_v34 = vld [vmem:[%s2948_s4 + $0x98] sm:$0xff]  ;;  %v2131_v36 = vpack.c.bf16 %v1110_v30, %v1109_v29  ;;  %v1077_v29 = vsub.s32 0, %v2451_v3  ;;  %v1083_v30 = vsub.s32 1, %v2451_v3 }
 0x25c   : > { %v2713_v39 = vadd.f32 %v1700_v38, %v872_v37  ;;  %v1701_v40 = vpop.f32.mrb[6].mxu0  ;;  %v2133_v37 = vpack.c.bf16 %v1128_v34, %v1127_v33  ;;  %v1111_v38 = vld [vmem:[%s2948_s4 + $0x10] sm:$0xff] }
 0x25d   : > { %v1702_v41 = vpop.f32.mrb[7].mxu0 }
 0x25e   : > { %v1703_v42 = vadd.f32 %v1702_v41, %v1701_v40  ;;  %v888_v44 = vmul.f32 %v2713_v39, %v2713_v39  ;;  %v1112_v40 = vld [vmem:[%s2948_s4 + $0x18] sm:$0xff] }
 0x260   : > { %v2715_v43 = vadd.f32 %v1877_v35, %v1703_v42  ;;  %v1129_v42 = vld [vmem:[%s2948_s4 + $0xa0] sm:$0xff] }
 0x262   : > { %v881_v45 = vadd.f32 %v2715_v43, %v2713_v39  ;;  %v889_v46 = vmul.f32 %v2715_v43, %v2715_v43 }
 0x264   : > { %v882_v47 = vrot.slane %v881_v45, 4  ;;  %v890_v48 = vadd.f32 %v889_v46, %v888_v44  ;;  %v1130_v44 = vld [vmem:[%s2948_s4 + $0xa8] sm:$0xff] }
 0x265   : > { %v2137_v46 = vpack.c.bf16 %v1130_v44, %v1129_v42 }
 0x266   : > { %v883_v49 = vadd.f32 %v882_v47, %v881_v45  ;;  %v891_v50 = vrot.slane %v890_v48, 4  ;;  %v2135_v45 = vpack.c.bf16 %v1112_v40, %v1111_v38  ;;  %v1113_v47 = vld [vmem:[%s2948_s4 + $0x20] sm:$0xff] }
 0x268   : > { %v884_v51 = vrot.slane %v883_v49, 2  ;;  %v892_v53 = vadd.f32 %v891_v50, %v890_v48  ;;  %v1114_v48 = vld [vmem:[%s2948_s4 + $0x28] sm:$0xff]  ;;  %v1132_v50 = vld [vmem:[%s2948_s4 + $0xb8] sm:$0xff] }
 0x26a   : > { %v885_v54 = vadd.f32 %v884_v51, %v883_v49  ;;  %v893_v55 = vrot.slane %v892_v53, 2  ;;  %v1131_v49 = vld [vmem:[%s2948_s4 + $0xb0] sm:$0xff]  ;;  %v2139_v51 = vpack.c.bf16 %v1114_v48, %v1113_v47 }
 0x26c   : > { %v886_v56 = vrot.slane %v885_v54, 1  ;;  %v894_v57 = vadd.f32 %v893_v55, %v892_v53  ;;  %v2141_v53 = vpack.c.bf16 %v1132_v50, %v1131_v49  ;;  %v1116_v55 = vld [vmem:[%s2948_s4 + $0x38] sm:$0xff] }
 0x26e   : > { %v895_v58 = vrot.slane %v894_v57, 1  ;;  %v887_v59 = vadd.f32 %v886_v56, %v885_v54  ;;  %v1115_v54 = vld [vmem:[%s2948_s4 + $0x30] sm:$0xff]  ;;  %v1133_v56 = vld [vmem:[%s2948_s4 + $0xc0] sm:$0xff] }
 0x270   : > { %v896_v60 = vadd.f32 %v895_v58, %v894_v57  ;;  %v1134_v57 = vld [vmem:[%s2948_s4 + $0xc8] sm:$0xff]  ;;  %v2143_v58 = vpack.c.bf16 %v1116_v55, %v1115_v54  ;;  %v1331_v55 = vld [vmem:[%s2952_s8 + $0x18] sm:$0xff] }
 0x271   : > { %v1329_v54 = vld [vmem:[%s2952_s8 + $0x8] sm:$0xff] }
 0x272   : > { %v897_v61 = vsel %vm419_vm2, %v887_v59, %v896_v60  ;;  %v2145_v59 = vpack.c.bf16 %v1134_v57, %v1133_v56  ;;  %v1117_v60 = vld [vmem:[%s2948_s4 + $0x40] sm:$0xff]  ;;  %v2197_v56 = vpack.c.bf16 %v1331_v55, %v1330_v21 }
 0x273   : > { %1911 = vmatmul.mubr.f32.vlgmr.msra.gmra.mrb[8].mxu0 %v897_v61  ;;  %v1118_v61 = vld [vmem:[%s2948_s4 + $0x48] sm:$0xff]  ;;  %v1332_v57 = vld [vmem:[%s2952_s8 + $0x20] sm:$0xff] }
 0x274   : > { %2164 = vmatpush3.bf16.msra.mxu0 %v2161_v5  ;;  %v2147_v62 = vpack.c.bf16 %v1118_v61, %v1117_v60  ;;  %v1119_v5 = vld [vmem:[%s2948_s4 + $0x50] sm:$0xff]  ;;  %v1335_v61 = vld [vmem:[%s2952_s8 + $0x38] sm:$0xff] }
 0x275   : > { %2166 = vmatprep.subr.bf16.mxu0 %v2165_v8  ;;  %v1334_v60 = vld [vmem:[%s2952_s8 + $0x30] sm:$0xff] }
 0x278   : > { %2168 = vmatpush3.bf16.msra.mxu0 %v2165_v8  ;;  %v2151_v8 = vpack.c.bf16 %v1120_v6, %v1119_v5 }
 0x279   : > { %2170 = vmatprep.subr.bf16.mxu0 %v2169_v11 }
 0x27c   : > { %2172 = vmatpush3.bf16.msra.mxu0 %v2169_v11  ;;  %v1153_v11 = vld [vmem:[%s2948_s4 + $0x160] sm:$0xff] }
 0x27d   : > { %2174 = vmatprep.subr.bf16.mxu0 %v2173_v14  ;;  %v2185_v16 = vpack.c.bf16 %v1154_v13, %v1153_v11 }
 0x280   : > { %2176 = vmatpush3.bf16.msra.mxu0 %v2173_v14  ;;  %v1121_v14 = vld [vmem:[%s2948_s4 + $0x60] sm:$0xff] }
 0x281   : > { %2178 = vmatprep.subr.bf16.mxu0 %v2177_v17 }
 0x284   : > { %2180 = vmatpush3.bf16.msra.mxu0 %v2177_v17  ;;  %v2155_v17 = vpack.c.bf16 %v1122_v15, %v1121_v14 }
 0x285   : > { %2182 = vmatprep.subr.bf16.mxu0 %v2181_v7 }
 0x288   : > { %2184 = vmatpush3.bf16.msra.mxu0 %v2181_v7 }
 0x289   : > { %2186 = vmatprep.subr.bf16.mxu0 %v2185_v16 }
 0x28c   : > { %2188 = vmatpush3.bf16.msra.mxu0 %v2185_v16 }
 0x346   : > { %v980_v18 = vpop.f32.mrb[8].mxu0 }
 0x347   : > { %v984_v19 = vmul.f32 %v980_v18, %v980_v18  ;;  %v1912_v22 = vpop.f32.mrb[9].mxu0  ;;  %v991_v27 = vsub.f32 0.0, %v980_v18 }
 0x348   : > { %v1155_v22 = vld [vmem:[%s2948_s4 + $0x170] sm:$0xff] }
 0x349   : > { %v986_v23 = vrot.slane %v984_v19, 7  ;;  %v1140_v19 = vld [vmem:[%s2948_s4 + $0xf8] sm:$0xff] }
 0x34b   : > { %v988_v24 = vsub.f32 %v980_v18, %v986_v23  ;;  %v1139_v18 = vld [vmem:[%s2948_s4 + $0xf0] sm:$0xff] }
 0x34c   : > { %v2157_v23 = vpack.c.bf16 %v1140_v19, %v1139_v18 }
 0x34d   : > { %v989_v25 = vadd.f32 1e-05, %v988_v24  ;;  %v1156_v24 = vld [vmem:[%s2948_s4 + $0x178] sm:$0xff] }
 0x34f   : > { %2222 = vrsqrt.f32 %v989_v25  ;;  %v1123_v25 = vld [vmem:[%s2948_s4 + $0x70] sm:$0xff] }
 0x359   : > { %v2223_v26 = vpop.eup %2222 }
 0x35a   : > { %v993_v28 = vrot.slane %v2223_v26, 1  ;;  %v1124_v26 = vld [vmem:[%s2948_s4 + $0x78] sm:$0xff] }
 0x35c   : > { %v995_v31 = vmul.f32 %v993_v28, %v991_v27  ;;  %v2189_v27 = vpack.c.bf16 %v1156_v24, %v1155_v22 }
 0x35e   : > { %v997_v35 = vrot.slane %v995_v31, 7  ;;  %2190 = vmatprep.subr.bf16.mxu0 %v2189_v27 }
 0x35f   : > { %2192 = vmatpush3.bf16.msra.mxu0 %v2189_v27 }
 0x360   : > { %v999_v41 = vsel %vm419_vm2, %v993_v28, %v997_v35  ;;  %v2159_v28 = vpack.c.bf16 %v1124_v26, %v1123_v25 }
 0x361   : > { %1916 = vmatmul.mubr.msk.f32.vlgmr.msra.gmra.mrb[4].mxu1 %vm1001_vm8, %v999_v41 }
 0x362   : > { %2132 = vmatpush3.bf16.msra.mxu1 %v2131_v36 }
 0x363   : > { %2134 = vmatprep.subr.bf16.mxu1 %v2133_v37 }
 0x366   : > { %2136 = vmatpush3.bf16.msra.mxu1 %v2135_v45 }
 0x367   : > { %2138 = vmatprep.subr.bf16.mxu1 %v2137_v46 }
 0x36a   : > { %2140 = vmatpush3.bf16.msra.mxu1 %v2139_v51 }
 0x36b   : > { %2142 = vmatprep.subr.bf16.mxu1 %v2141_v53  ;;  %v1328_v53 = vld [vmem:[%s2952_s8] sm:$0xff] }
 0x36c   : > { %v2194_v20 = vpack.c.bf16 %v1329_v54, %v1328_v53 }
 0x36e   : > { %2144 = vmatpush3.bf16.msra.mxu1 %v2143_v58  ;;  %v1333_v58 = vld [vmem:[%s2952_s8 + $0x28] sm:$0xff] }
 0x36f   : > { %2146 = vmatprep.subr.bf16.mxu1 %v2145_v59  ;;  %v2200_v59 = vpack.c.bf16 %v1333_v58, %v1332_v57 }
 0x372   : > { %2148 = vmatpush3.bf16.msra.mxu1 %v2147_v62  ;;  %v2203_v62 = vpack.c.bf16 %v1335_v61, %v1334_v60 }
 0x373   : > { %2150 = vmatprep.subr.bf16.mxu1 %v2149_v2 }
 0x376   : > { %2152 = vmatpush3.bf16.msra.mxu1 %v2151_v8 }
 0x377   : > { %2154 = vmatprep.subr.bf16.mxu1 %v2153_v12 }
 0x37a   : > { %2156 = vmatpush3.bf16.msra.mxu1 %v2155_v17 }
 0x37b   : > { %2158 = vmatprep.subr.bf16.mxu1 %v2157_v23 }
 0x37e   : > { %2160 = vmatpush3.bf16.msra.mxu1 %v2159_v28 }
 0x37f   : > { %2193 = vmatprep.subr.bf16.mxu1 %v2234_v52 }
 0x434   : > { %v1071_v31 = vpop.f32.mrb[4].mxu1 }
 0x435   : > { %v1078_v33 = vrot.slane %v1071_v31, %v1077_v29  ;;  %v1917_v34 = vpop.f32.mrb[5].mxu1  ;;  %v1084_v37 = vrot.slane %v1071_v31, %v1083_v30 }
 0x437   : > { %v1079_v35 = vmul.f32 %v1078_v33, %v2713_v39  ;;  %v1080_v36 = vmul.f32 %v1078_v33, %v2715_v43 }
 0x439   : > { %v1085_v38 = vadd.f32 %v1084_v37, %v1079_v35  ;;  %v1086_v40 = vadd.f32 %v1084_v37, %v1080_v36  ;;  %v1425_v35 = vld [vmem:[%s2953_s9] sm:$0xf] }
 0x43b   : > { %v1088_v41 = vmax.f32 %v1086_v40, 0.0  ;;  %v1087_v42 = vmax.f32 %v1085_v38, 0.0 }
 0x43d   : > { %v1090_v44 = vrot.slane %v1088_v41, 7  ;;  %v1093_v45 = vrot.slane %v1087_v42, 7  ;;  %1221 = vmatprep.mubr.f32.mxu1 %v1087_v42  ;;  %v1098_v46 = vrot.slane %v1087_v42, 1  ;;  %v1099_v47 = vrot.slane %v1088_v41, 1 }
 0x43f   : > { %v1100_v48 = vsel %vm425_vm0, %v1098_v46, %v1099_v47  ;;  %v1097_v49 = vsel %vm419_vm2, %v1090_v44, %v1093_v45  ;;  %v1094_v39 = vsel %vm419_vm2, %v1093_v45, %v1090_v44  ;;  %v1104_v43 = vsel %vm425_vm0, %v1099_v47, %v1098_v46 }
 0x440   : > { %1950 = vmatprep.mubr.f32.mxu0 %v1100_v48  ;;  %v1105_v50 = vsel %vm2475_vm1, %v1100_v48, %v1097_v49  ;;  %v1108_v51 = vsel %vm2479_vm3, %v1094_v39, %v1104_v43 }
 0x441   : > { %1222 = vmatmul.mubr.f32.vlgmr.msra.gmra.mrb[6].mxu1 %v1105_v50  ;;  %1951 = vmatmul.mubr.f32.vlgmr.msra.gmra.mrb[10].mxu0 %v1108_v51 }
 0x442   : > { %1226 = vmatprep.mubr.f32.mxu1 %v1088_v41  ;;  %2195 = vmatpush3.bf16.msra.mxu1 %v2194_v20 }
 0x443   : > { %2196 = vmatprep.subr.bf16.mxu1 %v2234_v52 }
 0x445   : > { %1227 = vmatmul.mubr.f32.gmra.mrb[8].mxu1 %v1094_v39 }
 0x446   : > { %1969 = vmatprep.mubr.msk.f32.mxu1 %vm2236_vm7, %v2237_v32  ;;  %2198 = vmatpush3.bf16.msra.mxu1 %v2197_v56 }
 0x447   : > { %2199 = vmatprep.subr.bf16.mxu1 %v2234_v52 }
 0x44a   : > { %2201 = vmatpush3.bf16.msra.mxu1 %v2200_v59 }
 0x44b   : > { %2202 = vmatprep.subr.bf16.mxu1 %v2234_v52 }
 0x44e   : > { %2204 = vmatpush3.bf16.msra.mxu1 %v2203_v62 }
 0x44f   : > { %1972 = vmatprep.subr.mxu1 %v2237_v32 }
 0x514   : > { %v1773_v63 = vpop.f32.mrb[6].mxu1  ;;  %v1952_v0 = vpop.f32.mrb[10].mxu0 }
 0x515   : > { %v1774_v1 = vpop.f32.mrb[7].mxu1  ;;  %v1298_v2 = vpop.f32.mrb[11].mxu0 }
 0x516   : > { %v1775_v4 = vadd.f32 %v1774_v1, %v1773_v63 }
 0x518   : > { %v1299_v5 = vadd.f32 %v1775_v4, %v1298_v2  ;;  %v1776_v6 = vpop.f32.mrb[8].mxu1 }
 0x519   : > { %v1777_v7 = vpop.f32.mrb[9].mxu1 }
 0x51a   : > { %v1778_v8 = vadd.f32 %v1777_v7, %v1776_v6  ;;  %v1316_v9 = vmul.f32 %v1299_v5, %v1299_v5  ;;  %v1307_v11 = vsel %vm660_vm6, %v1299_v5, 0.0 }
 0x51c   : > { %v1304_v10 = vadd.f32 %v1952_v0, %v1778_v8  ;;  %v1318_v14 = vsel %vm660_vm6, %v1316_v9, 0.0 }
 0x51e   : > { %v1308_v12 = vsel %vm660_vm6, %v1304_v10, 0.0  ;;  %v1317_v52 = vmul.f32 %v1304_v10, %v1304_v10 }
 0x51f   : > { %v1309_v13 = vadd.f32 %v1308_v12, %v1307_v11 }
 0x520   : > { %v1319_v15 = vsel %vm660_vm6, %v1317_v52, 0.0 }
 0x521   : > { %v1310_v16 = vrot.slane %v1309_v13, 4  ;;  %v1320_v17 = vadd.f32 %v1319_v15, %v1318_v14 }
 0x523   : > { %v1311_v18 = vadd.f32 %v1310_v16, %v1309_v13  ;;  %v1321_v19 = vrot.slane %v1320_v17, 4 }
 0x525   : > { %v1312_v22 = vrot.slane %v1311_v18, 2  ;;  %v1322_v23 = vadd.f32 %v1321_v19, %v1320_v17 }
 0x527   : > { %v1313_v24 = vadd.f32 %v1312_v22, %v1311_v18  ;;  %v1323_v25 = vrot.slane %v1322_v23, 2 }
 0x529   : > { %v1314_v26 = vrot.slane %v1313_v24, 1  ;;  %v1324_v27 = vadd.f32 %v1323_v25, %v1322_v23 }
 0x52b   : > { %v1325_v28 = vrot.slane %v1324_v27, 1  ;;  %v1315_v31 = vadd.f32 %v1314_v26, %v1313_v24 }
 0x52d   : > { %v1326_v33 = vadd.f32 %v1325_v28, %v1324_v27 }
 0x52f   : > { %v1327_v34 = vsel %vm419_vm2, %v1315_v31, %v1326_v33 }
 0x530   : > { %1970 = vmatmul.mubr.msk.f32.vlgmr.msra.gmra.mrb[10].mxu1 %vm660_vm6, %v1327_v34 }
 0x531   : > { %1974 = vmatprep.mubr.msk.f32.mxu1 %vm2236_vm7, %v2237_v32  ;;  %1973 = vmatpush3.msk.msra.mxu1 %vm1430_vm9, %v1425_v35 }
 0x603   : > { %v1405_v36 = vpop.f32.mrb[10].mxu1 }
 0x604   : > { %v1409_v37 = vmul.f32 %v1405_v36, %v1405_v36  ;;  %v1971_v38 = vpop.f32.mrb[11].mxu1  ;;  %v1416_v45 = vsub.f32 0.0, %v1405_v36 }
 0x606   : > { %v1411_v40 = vrot.slane %v1409_v37, 7 }
 0x608   : > { %v1413_v41 = vsub.f32 %v1405_v36, %v1411_v40 }
 0x60a   : > { %v1414_v42 = vadd.f32 1e-05, %v1413_v41 }
 0x60c   : > { %2224 = vrsqrt.f32 %v1414_v42 }
 0x616   : > { %v2225_v44 = vpop.eup %2224 }
 0x617   : > { %v1418_v46 = vrot.slane %v2225_v44, 1 }
 0x619   : > { %v1420_v47 = vmul.f32 %v1418_v46, %v1416_v45 }
 0x61b   : > { %v1422_v48 = vrot.slane %v1420_v47, 7 }
 0x61d   : > { %v1424_v32 = vsel %vm419_vm2, %v1418_v46, %v1422_v48 }
 0x61e   : > { %1975 = vmatmul.mubr.msk.f32.vlgmr.msra.gmra.mrb[12].mxu1 %vm1426_vm10, %v1424_v32 }
 0x6f1   : > { %v1500_v49 = vpop.f32.mrb[12].mxu1 }
 0x6f2   : > { %v1507_v39 = vrot.slane %v1500_v49, %v1077_v29  ;;  %v1976_v43 = vpop.f32.mrb[13].mxu1  ;;  %v1513_v53 = vrot.slane %v1500_v49, %v1083_v30 }
 0x6f4   : > { %v1508_v50 = vmul.f32 %v1507_v39, %v1299_v5  ;;  %v1509_v51 = vmul.f32 %v1507_v39, %v1304_v10 }
 0x6f6   : > { %v1514_v54 = vadd.f32 %v1513_v53, %v1508_v50  ;;  %v1515_v20 = vadd.f32 %v1513_v53, %v1509_v51 }
 0x6f8   : > { %1516 = vst.msk [vmem:[%s379_s25] sm:$0xff] %vm660_vm6, %v1514_v54  ;;  %1517 = vst.msk [vmem:[%s379_s25 + $0x8] sm:$0xff] %vm660_vm6, %v1515_v20 }
 0x6f9 PF: > { %s20_s13 = sadd.s32 1, %s2232_s13  }
 0x6fa   : > { %p17_p4 = scmp.ge.s32.totalorder %s20_s13, 4  }
 0x6fc   :  { %19 = sbr.rel (!%p17_p4) target bundleno = 1 (0x1), region = 93 }

</bundles_post_ra>
